<compile_context>
chip_gen: v5e
topology: v5e:2x2
jax: 0.10.0
libtpu: 0.0.40
codegen_flags: <defaults>
</compile_context>

<pallas_src>
import functools

import jax
import jax.numpy as jnp
from jax.experimental import pallas as pl
from jax.experimental.pallas import tpu as pltpu


def _attn_kernel(*refs, scaling_factor, has_dropout):
    if has_dropout:
        x1_ref, x2_ref, mask_ref, o_ref = refs
    else:
        x1_ref, x2_ref, o_ref = refs
        mask_ref = None

    q = x1_ref[...]                      # (G, S1, D), input dtype (fed to MXU as-is)
    k = x2_ref[...]                      # (G, S2, D), input dtype

    # qk[g, q, s] = sum_d q[g, q, d] * k[g, s, d]   (contract D, no explicit k.T)
    qk = jax.lax.dot_general(
        q, k,
        dimension_numbers=(((2,), (2,)), ((0,), (0,))),
        preferred_element_type=jnp.float32,
    ) * scaling_factor                   # (G, S1, S2), f32

    # Numerically stable softmax over the last dim (f32 math).
    m = jnp.max(qk, axis=-1, keepdims=True)
    e = jnp.exp(qk - m)
    denom = jnp.sum(e, axis=-1, keepdims=True)
    p_sm = e * pl.reciprocal(denom, approx=True)

    if has_dropout:
        # mask holds 0.0 (dropped) or 1/(1-p) (kept): dropout is one multiply.
        p_sm = p_sm * mask_ref[...]

    # out[g, q, d] = sum_s p_sm[g, q, s] * k[g, s, d]
    out = jax.lax.dot_general(
        p_sm.astype(k.dtype), k,
        dimension_numbers=(((2,), (1,)), ((0,), (0,))),
        preferred_element_type=jnp.float32,
    )                                    # (G, S1, D), f32
    o_ref[...] = out.astype(o_ref.dtype)


def _heads_per_block(bh, s1, s2, d, itemsize, vmem_budget_bytes=8 * 1024 * 1024):
    """Largest divisor of bh whose (double-buffered) block working set fits VMEM budget."""
    per_head = (s1 * d + s2 * d + s1 * s2 + s1 * d) * itemsize
    cap = max(1, min(bh, vmem_budget_bytes // max(1, 2 * per_head)))
    for g in range(cap, 0, -1):
        if bh % g == 0:
            return g
    return 1


def attention_model(x1, x2, *, scaling_factor, dropout_p, seed=0):
    """x1: (B, H, S1, D), x2: (B, H, S2, D) -> (B, H, S1, D)."""
    B, H, S1, D = x1.shape
    B2, H2, S2, D2 = x2.shape
    assert (B, H, D) == (B2, H2, D2), "batch/head/feature dims must match"

    BH = B * H
    x1_f = x1.reshape(BH, S1, D)
    x2_f = x2.reshape(BH, S2, D)

    has_dropout = float(dropout_p) > 0.0

    G = _heads_per_block(BH, S1, S2, D, jnp.dtype(x1.dtype).itemsize)
    grid = (BH // G,)

    in_specs = [
        pl.BlockSpec((G, S1, D), lambda i: (i, 0, 0)),
        pl.BlockSpec((G, S2, D), lambda i: (i, 0, 0)),
    ]
    args = [x1_f, x2_f]

    if has_dropout:
        # Train-mode dropout (matches F.dropout default): keep w.p. (1-p),
        # scale kept values by 1/(1-p). Random bits come from jax.random so the
        # kernel stays portable (no TPU-only PRNG primitives).
        keep = jax.random.bernoulli(
            jax.random.PRNGKey(seed), 1.0 - float(dropout_p), (BH, S1, S2))
        mask = keep.astype(jnp.float32) * (1.0 / (1.0 - float(dropout_p)))
        in_specs.append(pl.BlockSpec((G, S1, S2), lambda i: (i, 0, 0)))
        args.append(mask)

    kernel = functools.partial(
        _attn_kernel,
        scaling_factor=float(scaling_factor),
        has_dropout=has_dropout,
    )

    out_flat = pl.pallas_call(
        kernel,
        out_shape=jax.ShapeDtypeStruct((BH, S1, D), x1.dtype),
        grid=grid,
        in_specs=in_specs,
        out_specs=pl.BlockSpec((G, S1, D), lambda i: (i, 0, 0)),
        compiler_params=pltpu.CompilerParams(
            dimension_semantics=("parallel",),
        ),
    )(*args)

    return out_flat.reshape(B, H, S1, D)


if __name__ == "__main__":
    key = jax.random.PRNGKey(0)
    k1, k2 = jax.random.split(key)

    # Small shapes consistent with the forward pass: x1 matches the spec's
    # (1, 32, 4, 4); x2's last dim must equal x1's so x1 @ x2^T is valid.
    B, H, S1, S2, D = 1, 32, 4, 10, 4
    x1 = jax.random.normal(k1, (B, H, S1, D), dtype=jnp.float32)
    x2 = jax.random.normal(k2, (B, H, S2, D), dtype=jnp.float32)

    scaling_factor = 1.0 / (D ** 0.5)   # Model.__init__(scaling_factor, dropout)
    dropout_p = 0.1

    out = attention_model(x1, x2, scaling_factor=scaling_factor,
                          dropout_p=dropout_p, seed=0)
    jax.block_until_ready(out)
    assert out.shape == (B, H, S1, D)
    assert bool(jnp.all(jnp.isfinite(out)))

    # Sanity check vs pure-JAX reference with dropout disabled.  Tolerance is
    # loosened because the softmax reciprocal uses the approximate (EUP) path.
    out_nodrop = attention_model(x1, x2, scaling_factor=scaling_factor,
                                 dropout_p=0.0, seed=0)
    qk = jnp.einsum("bhqd,bhkd->bhqk", x1, x2) * scaling_factor
    ref = jnp.einsum("bhqk,bhkd->bhqd", jax.nn.softmax(qk, axis=-1), x2)
    assert jnp.allclose(out_nodrop, ref, atol=2e-2, rtol=2e-2), (
        float(jnp.max(jnp.abs(out_nodrop - ref))))

    print("KERNEL_OK")
</pallas_src>

<mosaic_0001>
module attributes {stable_mosaic.version = 11 : i64} {
  func.func @_attn_kernel(%arg0: i32, %arg1: memref<32x4x4xf32, #tpu.memory_space<vmem>>, %arg2: memref<32x10x4xf32, #tpu.memory_space<vmem>>, %arg3: memref<32x4x10xf32, #tpu.memory_space<vmem>>, %arg4: memref<32x4x4xf32, #tpu.memory_space<vmem>>) attributes {dimension_semantics = [#tpu.dimension_semantics<parallel>], iteration_bounds = array<i64: 1>, scalar_prefetch = 0 : i64, scratch_operands = 0 : i64, tpu.core_type = #tpu.core_type<tc>, window_params = [{transform_indices = @transform_0, window_bounds = array<i64: 32, 4, 4>}, {transform_indices = @transform_1, window_bounds = array<i64: 32, 10, 4>}, {transform_indices = @transform_2, window_bounds = array<i64: 32, 4, 10>}, {transform_indices = @transform_3, window_bounds = array<i64: 32, 4, 4>}]} {
    %c0 = arith.constant 0 : index
    %c0_0 = arith.constant 0 : index
    %c0_1 = arith.constant 0 : index
    %0 = vector.load %arg1[%c0, %c0_0, %c0_1] : memref<32x4x4xf32, #tpu.memory_space<vmem>>, vector<32x4x4xf32>
    %c0_2 = arith.constant 0 : index
    %c0_3 = arith.constant 0 : index
    %c0_4 = arith.constant 0 : index
    %1 = vector.load %arg2[%c0_2, %c0_3, %c0_4] : memref<32x10x4xf32, #tpu.memory_space<vmem>>, vector<32x10x4xf32>
    %cst = arith.constant dense<0.000000e+00> : vector<32x4x10xf32>
    %2 = tpu.matmul %0, %1, %cst {dimension_numbers = #tpu.dot_dimension_numbers<[2], [2], [1], [1], [0, 0, 0, 1, 1, 1], [0], [0]>} : vector<32x4x4xf32>, vector<32x10x4xf32>, vector<32x4x10xf32> -> vector<32x4x10xf32>
    %cst_5 = arith.constant 5.000000e-01 : f32
    %3 = vector.broadcast %cst_5 : f32 to vector<32x4x10xf32>
    %4 = arith.mulf %2, %3 : vector<32x4x10xf32>
    %cst_6 = arith.constant dense<0xFF800000> : vector<32x4xf32>
    %5 = vector.multi_reduction <maximumf>, %4, %cst_6 [2] : vector<32x4x10xf32> to vector<32x4xf32>
    %6 = vector.shape_cast %5 : vector<32x4xf32> to vector<32x4x1xf32>
    %7 = vector.broadcast %6 : vector<32x4x1xf32> to vector<32x4x10xf32>
    %8 = arith.subf %4, %7 : vector<32x4x10xf32>
    %9 = math.exp %8 : vector<32x4x10xf32>
    %cst_7 = arith.constant dense<0.000000e+00> : vector<32x4xf32>
    %10 = vector.multi_reduction <add>, %9, %cst_7 [2] : vector<32x4x10xf32> to vector<32x4xf32>
    %11 = vector.shape_cast %10 : vector<32x4xf32> to vector<32x4x1xf32>
    %12 = tpu.reciprocal %11 {approx = true} : vector<32x4x1xf32> -> vector<32x4x1xf32>
    %13 = vector.broadcast %12 : vector<32x4x1xf32> to vector<32x4x10xf32>
    %14 = arith.mulf %9, %13 : vector<32x4x10xf32>
    %c0_8 = arith.constant 0 : index
    %c0_9 = arith.constant 0 : index
    %c0_10 = arith.constant 0 : index
    %15 = vector.load %arg3[%c0_8, %c0_9, %c0_10] : memref<32x4x10xf32, #tpu.memory_space<vmem>>, vector<32x4x10xf32>
    %16 = arith.mulf %14, %15 : vector<32x4x10xf32>
    %cst_11 = arith.constant dense<0.000000e+00> : vector<32x4x4xf32>
    %17 = tpu.matmul %16, %1, %cst_11 {dimension_numbers = #tpu.dot_dimension_numbers<[2], [1], [1], [2], [0, 0, 0, 1, 1, 2], [0], [0]>} : vector<32x4x10xf32>, vector<32x10x4xf32>, vector<32x4x4xf32> -> vector<32x4x4xf32>
    %c0_12 = arith.constant 0 : index
    %c0_13 = arith.constant 0 : index
    %c0_14 = arith.constant 0 : index
    %18 = vector.load %arg4[%c0_12, %c0_13, %c0_14] : memref<32x4x4xf32, #tpu.memory_space<vmem>>, vector<32x4x4xf32>
    tpu.vector_store %arg4[%c0_12, %c0_13, %c0_14], %17 {strides = array<i32>} : memref<32x4x4xf32, #tpu.memory_space<vmem>>, vector<32x4x4xf32>,
    return
  }
  func.func @transform_0(%arg0: i32) -> (i32, i32, i32) {
    %c0_i32 = arith.constant 0 : i32
    %c0_i32_0 = arith.constant 0 : i32
    %c0_i32_1 = arith.constant 0 : i32
    return %arg0, %c0_i32, %c0_i32_0 : i32, i32, i32
  }
  func.func @transform_1(%arg0: i32) -> (i32, i32, i32) {
    %c0_i32 = arith.constant 0 : i32
    %c0_i32_0 = arith.constant 0 : i32
    %c0_i32_1 = arith.constant 0 : i32
    return %arg0, %c0_i32, %c0_i32_0 : i32, i32, i32
  }
  func.func @transform_2(%arg0: i32) -> (i32, i32, i32) {
    %c0_i32 = arith.constant 0 : i32
    %c0_i32_0 = arith.constant 0 : i32
    %c0_i32_1 = arith.constant 0 : i32
    return %arg0, %c0_i32, %c0_i32_0 : i32, i32, i32
  }
  func.func @transform_3(%arg0: i32) -> (i32, i32, i32) {
    %c0_i32 = arith.constant 0 : i32
    %c0_i32_0 = arith.constant 0 : i32
    %c0_i32_1 = arith.constant 0 : i32
    return %arg0, %c0_i32, %c0_i32_0 : i32, i32, i32
  }
}

</mosaic_0001>

<bundles_post_ra>
// kernel: tpu_custom_call.1
= control target key start
LH: loop header
LB: loop body
LE: loop exit
PB: predicated region body
PF: predicated region fallthrough
CT: control target
= control target key end

     0   :  { %vm110_vm0 = vcmask 31744   ;;  %vm1071_vm1 = vcmask 76800   ;;  %vm1492_vm2 = vcmask 1041408   ;;  %vm1488_vm3 = vcmask 80896   ;;  %s3883_s1 = inlined_call_operand.vmem [shape: f32[32,10,4], index: 1, kind: input, shape index: {}]   ;;  %s3884_s0 = inlined_call_operand.vmem [shape: f32[32,4,4], index: 0, kind: input, shape index: {}]   ;;  %s3885_s2 = inlined_call_operand.vmem [shape: f32[32,4,10], index: 2, kind: input, shape index: {}]   ;;  %s3886_s3 = inlined_call_operand.vmem [shape: f32[32,4,4], index: 3, kind: output, shape index: {}]  }
   0x1   :  { %v47_v0 = vld [vmem:[%s3883_s1 + $0x8] sm:$0x3]  ;;  %v53_v2 = vld [vmem:[%s3883_s1 + $0x38] sm:$0x3]  ;;  %v46_v3 = vld [vmem:[%s3883_s1] sm:$0xff]  ;;  %vm2290_vm4 = vcmask 27648  }
   0x2   :  { %v51_v1 = vld [vmem:[%s3883_s1 + $0x28] sm:$0x3]  ;;  %2327 = vmatpush.xpose.msk.msra.mxu0 %vm110_vm0, %v47_v0  ;;  %2336 = vmatpush.xpose.msk.msra.mxu3 %vm110_vm0, %v53_v2  ;;  %v50_v4 = vld [vmem:[%s3883_s1 + $0x20] sm:$0xff]  ;;  %v49_v5 = vld [vmem:[%s3883_s1 + $0x18] sm:$0x3] }
   0x3   :  { %2333 = vmatpush.xpose.msk.msra.mxu2 %vm110_vm0, %v51_v1  ;;  %v52_v6 = vld [vmem:[%s3883_s1 + $0x30] sm:$0xff]  ;;  %2330 = vmatpush.xpose.msk.msra.mxu1 %vm110_vm0, %v49_v5  ;;  %v59_v7 = vld [vmem:[%s3883_s1 + $0x68] sm:$0x3]  ;;  %v61_v8 = vld [vmem:[%s3883_s1 + $0x78] sm:$0x3] }
   0x4   :  { %v48_v9 = vld [vmem:[%s3883_s1 + $0x10] sm:$0xff]  ;;  %v14_v10 = vld [vmem:[%s3884_s0] sm:$0xf]  ;;  %v16_v11 = vld [vmem:[%s3884_s0 + $0x8] sm:$0xf] }
   0x5   :  { %v17_v12 = vld [vmem:[%s3884_s0 + $0xc] sm:$0xf]  ;;  %v55_v13 = vld [vmem:[%s3883_s1 + $0x48] sm:$0x3]  ;;  %v58_v14 = vld [vmem:[%s3883_s1 + $0x60] sm:$0xff] }
   0x6   :  { %2328 = vmatpush.xpose.msk.msra.mxu0 %vm110_vm0, %v46_v3  ;;  %2337 = vmatpush.xpose.msk.msra.mxu3 %vm110_vm0, %v52_v6  ;;  %v15_v15 = vld [vmem:[%s3884_s0 + $0x4] sm:$0xf]  ;;  %v60_v16 = vld [vmem:[%s3883_s1 + $0x70] sm:$0xff]  ;;  %v57_v17 = vld [vmem:[%s3883_s1 + $0x58] sm:$0x3] }
   0x7   :  { %2334 = vmatpush.xpose.msk.msra.mxu2 %vm110_vm0, %v50_v4  ;;  %2331 = vmatpush.xpose.msk.msra.mxu1 %vm110_vm0, %v48_v9  ;;  %v69_v18 = vld [vmem:[%s3883_s1 + $0xb8] sm:$0x3]  ;;  %v67_v19 = vld [vmem:[%s3883_s1 + $0xa8] sm:$0x3]  ;;  %v54_v20 = vld [vmem:[%s3883_s1 + $0x40] sm:$0xff] }
   0x8   :  { %v63_v21 = vld [vmem:[%s3883_s1 + $0x88] sm:$0x3]  ;;  %v56_v22 = vld [vmem:[%s3883_s1 + $0x50] sm:$0xff]  ;;  %v20_v23 = vld [vmem:[%s3884_s0 + $0x18] sm:$0xf] }
   0x9   :  { %2329 = vmatmul.msk.f32.vlgmr.msra.gmra.mxu0 %vm110_vm0, %v14_v10  ;;  %2338 = vmatmul.msk.f32.vlgmr.msra.gmra.mxu3 %vm110_vm0, %v17_v12  ;;  %v68_v24 = vld [vmem:[%s3883_s1 + $0xb0] sm:$0xff]  ;;  %v21_v25 = vld [vmem:[%s3884_s0 + $0x1c] sm:$0xf]  ;;  %v77_v28 = vld [vmem:[%s3883_s1 + $0xf8] sm:$0x3] }
   0xa   :  { %2348 = vmatpush.xpose.msk.msrb.mxu3 %vm110_vm0, %v61_v8  ;;  %2335 = vmatmul.msk.f32.vlgmr.msra.gmra.mxu2 %vm110_vm0, %v16_v11  ;;  %v18_v26 = vld [vmem:[%s3884_s0 + $0x10] sm:$0xf]  ;;  %v19_v27 = vld [vmem:[%s3884_s0 + $0x14] sm:$0xf]  ;;  %v65_v29 = vld [vmem:[%s3883_s1 + $0x98] sm:$0x3] }
   0xb   :  { %2345 = vmatpush.xpose.msk.msrb.mxu2 %vm110_vm0, %v59_v7  ;;  %2339 = vmatpush.xpose.msk.msrb.mxu0 %vm110_vm0, %v55_v13  ;;  %v62_v30 = vld [vmem:[%s3883_s1 + $0x80] sm:$0xff]  ;;  %v71_v32 = vld [vmem:[%s3883_s1 + $0xc8] sm:$0x3]  ;;  %v76_v34 = vld [vmem:[%s3883_s1 + $0xf0] sm:$0xff] }
   0xc   :  { %2332 = vmatmul.msk.f32.vlgmr.msra.gmra.mxu1 %vm110_vm0, %v15_v15  ;;  %v66_v31 = vld [vmem:[%s3883_s1 + $0xa0] sm:$0xff]  ;;  %v75_v33 = vld [vmem:[%s3883_s1 + $0xe8] sm:$0x3]  ;;  %v64_v35 = vld [vmem:[%s3883_s1 + $0x90] sm:$0xff] }
   0xd   :  { %2342 = vmatpush.xpose.msk.msrb.mxu1 %vm110_vm0, %v57_v17  ;;  %v73_v36 = vld [vmem:[%s3883_s1 + $0xd8] sm:$0x3]  ;;  %v24_v37 = vld [vmem:[%s3884_s0 + $0x28] sm:$0xf]  ;;  %v25_v38 = vld [vmem:[%s3884_s0 + $0x2c] sm:$0xf] }
   0xe   :  { %2349 = vmatpush.xpose.msk.msrb.mxu3 %vm110_vm0, %v60_v16  ;;  %v22_v39 = vld [vmem:[%s3884_s0 + $0x20] sm:$0xf]  ;;  %v23_v40 = vld [vmem:[%s3884_s0 + $0x24] sm:$0xf]  ;;  %v83_v42 = vld [vmem:[%s3883_s1 + $0x128] sm:$0x3] }
   0xf   :  { %2346 = vmatpush.xpose.msk.msrb.mxu2 %vm110_vm0, %v58_v14  ;;  %2340 = vmatpush.xpose.msk.msrb.mxu0 %vm110_vm0, %v54_v20  ;;  %v74_v41 = vld [vmem:[%s3883_s1 + $0xe0] sm:$0xff]  ;;  %v72_v44 = vld [vmem:[%s3883_s1 + $0xd0] sm:$0xff]  ;;  %v79_v45 = vld [vmem:[%s3883_s1 + $0x108] sm:$0x3] }
  0x10   :  { %v70_v43 = vld [vmem:[%s3883_s1 + $0xc0] sm:$0xff]  ;;  %v81_v46 = vld [vmem:[%s3883_s1 + $0x118] sm:$0x3]  ;;  %v29_v51 = vld [vmem:[%s3884_s0 + $0x3c] sm:$0xf] }
  0x11   :  { %2343 = vmatpush.xpose.msk.msrb.mxu1 %vm110_vm0, %v56_v22  ;;  %2350 = vmatmul.msk.f32.vlgmr.msrb.gmra.mxu3 %vm110_vm0, %v21_v25  ;;  %v85_v47 = vld [vmem:[%s3883_s1 + $0x138] sm:$0x3]  ;;  %v82_v48 = vld [vmem:[%s3883_s1 + $0x120] sm:$0xff]  ;;  %v80_v52 = vld [vmem:[%s3883_s1 + $0x110] sm:$0xff] }
  0x12   :  { %2360 = vmatpush.xpose.msk.msra.mxu3 %vm110_vm0, %v69_v18  ;;  %2347 = vmatmul.msk.f32.vlgmr.msrb.gmra.mxu2 %vm110_vm0, %v20_v23  ;;  %v28_v49 = vld [vmem:[%s3884_s0 + $0x38] sm:$0xf]  ;;  %v78_v50 = vld [vmem:[%s3883_s1 + $0x100] sm:$0xff]  ;;  %v27_v53 = vld [vmem:[%s3884_s0 + $0x34] sm:$0xf] }
  0x13   :  { %2357 = vmatpush.xpose.msk.msra.mxu2 %vm110_vm0, %v67_v19  ;;  %2351 = vmatpush.xpose.msk.msra.mxu0 %vm110_vm0, %v63_v21  ;;  %v26_v54 = vld [vmem:[%s3884_s0 + $0x30] sm:$0xf]  ;;  %v87_v56 = vld [vmem:[%s3883_s1 + $0x148] sm:$0x3]  ;;  %v93_v58 = vld [vmem:[%s3883_s1 + $0x178] sm:$0x3] }
  0x14   :  { %2341 = vmatmul.msk.f32.vlgmr.msrb.gmra.mxu0 %vm110_vm0, %v18_v26  ;;  %2344 = vmatmul.msk.f32.vlgmr.msrb.gmra.mxu1 %vm110_vm0, %v19_v27  ;;  %v84_v55 = vld [vmem:[%s3883_s1 + $0x130] sm:$0xff]  ;;  %v91_v57 = vld [vmem:[%s3883_s1 + $0x168] sm:$0x3]  ;;  %v89_v59 = vld [vmem:[%s3883_s1 + $0x158] sm:$0x3] }
  0x15   :  { %2354 = vmatpush.xpose.msk.msra.mxu1 %vm110_vm0, %v65_v29  ;;  %v86_v60 = vld [vmem:[%s3883_s1 + $0x140] sm:$0xff]  ;;  %v32_v61 = vld [vmem:[%s3884_s0 + $0x48] sm:$0xf]  ;;  %v92_v62 = vld [vmem:[%s3883_s1 + $0x170] sm:$0xff] }
  0x16   :  { %2361 = vmatpush.xpose.msk.msra.mxu3 %vm110_vm0, %v68_v24  ;;  %v33_v63 = vld [vmem:[%s3884_s0 + $0x4c] sm:$0xf]  ;;  %v90_v0 = vld [vmem:[%s3883_s1 + $0x160] sm:$0xff]  ;;  %v95_v3 = vld [vmem:[%s3883_s1 + $0x188] sm:$0x3] }
  0x17   :  { %2352 = vmatpush.xpose.msk.msra.mxu0 %vm110_vm0, %v62_v30  ;;  %2358 = vmatpush.xpose.msk.msra.mxu2 %vm110_vm0, %v66_v31  ;;  %v31_v1 = vld [vmem:[%s3884_s0 + $0x44] sm:$0xf]  ;;  %v30_v2 = vld [vmem:[%s3884_s0 + $0x40] sm:$0xf]  ;;  %v99_v4 = vld [vmem:[%s3883_s1 + $0x1a8] sm:$0x3] }
  0x18   :  { %v101_v5 = vld [vmem:[%s3883_s1 + $0x1b8] sm:$0x3]  ;;  %v88_v6 = vld [vmem:[%s3883_s1 + $0x150] sm:$0xff]  ;;  %v94_v8 = vld [vmem:[%s3883_s1 + $0x180] sm:$0xff] }
  0x19   :  { %2355 = vmatpush.xpose.msk.msra.mxu1 %vm110_vm0, %v64_v35  ;;  %2362 = vmatmul.msk.f32.vlgmr.msra.gmra.mxu3 %vm110_vm0, %v25_v38  ;;  %v97_v7 = vld [vmem:[%s3883_s1 + $0x198] sm:$0x3]  ;;  %v98_v9 = vld [vmem:[%s3883_s1 + $0x1a0] sm:$0xff]  ;;  %v100_v11 = vld [vmem:[%s3883_s1 + $0x1b0] sm:$0xff] }
  0x1a   :  { %2372 = vmatpush.xpose.msk.msrb.mxu3 %vm110_vm0, %v77_v28  ;;  %2359 = vmatmul.msk.f32.vlgmr.msra.gmra.mxu2 %vm110_vm0, %v24_v37  ;;  %v36_v10 = vld [vmem:[%s3884_s0 + $0x58] sm:$0xf]  ;;  %v37_v12 = vld [vmem:[%s3884_s0 + $0x5c] sm:$0xf]  ;;  %v96_v13 = vld [vmem:[%s3883_s1 + $0x190] sm:$0xff] }
  0x1b   :  { %2363 = vmatpush.xpose.msk.msrb.mxu0 %vm110_vm0, %v71_v32  ;;  %2369 = vmatpush.xpose.msk.msrb.mxu2 %vm110_vm0, %v75_v33  ;;  %v34_v14 = vld [vmem:[%s3884_s0 + $0x50] sm:$0xf]  ;;  %v35_v15 = vld [vmem:[%s3884_s0 + $0x54] sm:$0xf]  ;;  %v103_v16 = vld [vmem:[%s3883_s1 + $0x1c8] sm:$0x3] }
  0x1c   :  { %2353 = vmatmul.msk.f32.vlgmr.msra.gmra.mxu0 %vm110_vm0, %v22_v39  ;;  %2356 = vmatmul.msk.f32.vlgmr.msra.gmra.mxu1 %vm110_vm0, %v23_v40  ;;  %v105_v17 = vld [vmem:[%s3883_s1 + $0x1d8] sm:$0x3]  ;;  %v107_v18 = vld [vmem:[%s3883_s1 + $0x1e8] sm:$0x3]  ;;  %v102_v20 = vld [vmem:[%s3883_s1 + $0x1c0] sm:$0xff] }
  0x1d   :  { %2366 = vmatpush.xpose.msk.msrb.mxu1 %vm110_vm0, %v73_v36  ;;  %v109_v19 = vld [vmem:[%s3883_s1 + $0x1f8] sm:$0x3]  ;;  %v104_v21 = vld [vmem:[%s3883_s1 + $0x1d0] sm:$0xff]  ;;  %v40_v22 = vld [vmem:[%s3884_s0 + $0x68] sm:$0xf] }
  0x1e   :  { %2373 = vmatpush.xpose.msk.msrb.mxu3 %vm110_vm0, %v76_v34  ;;  %v108_v23 = vld [vmem:[%s3883_s1 + $0x1f0] sm:$0xff]  ;;  %v41_v24 = vld [vmem:[%s3884_s0 + $0x6c] sm:$0xf]  ;;  %v106_v25 = vld [vmem:[%s3883_s1 + $0x1e0] sm:$0xff] }
  0x1f   :  { %2370 = vmatpush.xpose.msk.msrb.mxu2 %vm110_vm0, %v74_v41  ;;  %2364 = vmatpush.xpose.msk.msrb.mxu0 %vm110_vm0, %v70_v43  ;;  %v38_v26 = vld [vmem:[%s3884_s0 + $0x60] sm:$0xf]  ;;  %v39_v27 = vld [vmem:[%s3884_s0 + $0x64] sm:$0xf]  ;;  %v44_v28 = vld [vmem:[%s3884_s0 + $0x78] sm:$0xf] }
  0x20   :  { %v45_v29 = vld [vmem:[%s3884_s0 + $0x7c] sm:$0xf]  ;;  %v42_v30 = vld [vmem:[%s3884_s0 + $0x70] sm:$0xf]  ;;  %v43_v31 = vld [vmem:[%s3884_s0 + $0x74] sm:$0xf] }
  0x21   :  { %2367 = vmatpush.xpose.msk.msrb.mxu1 %vm110_vm0, %v72_v44  ;;  %2374 = vmatmul.msk.f32.vlgmr.msrb.gmra.mxu3 %vm110_vm0, %v29_v51 }
  0x22   :  { %2384 = vmatpush.xpose.msk.msra.mxu3 %vm110_vm0, %v85_v47  ;;  %2371 = vmatmul.msk.f32.vlgmr.msrb.gmra.mxu2 %vm110_vm0, %v28_v49 }
  0x23   :  { %2381 = vmatpush.xpose.msk.msra.mxu2 %vm110_vm0, %v83_v42  ;;  %2375 = vmatpush.xpose.msk.msra.mxu0 %vm110_vm0, %v79_v45 }
  0x24   :  { %2368 = vmatmul.msk.f32.vlgmr.msrb.gmra.mxu1 %vm110_vm0, %v27_v53  ;;  %2365 = vmatmul.msk.f32.vlgmr.msrb.gmra.mxu0 %vm110_vm0, %v26_v54 }
  0x25   :  { %2378 = vmatpush.xpose.msk.msra.mxu1 %vm110_vm0, %v81_v46 }
  0x26   :  { %2385 = vmatpush.xpose.msk.msra.mxu3 %vm110_vm0, %v84_v55 }
  0x27   :  { %2382 = vmatpush.xpose.msk.msra.mxu2 %vm110_vm0, %v82_v48  ;;  %2376 = vmatpush.xpose.msk.msra.mxu0 %vm110_vm0, %v78_v50 }
  0x29   :  { %2379 = vmatpush.xpose.msk.msra.mxu1 %vm110_vm0, %v80_v52  ;;  %2386 = vmatmul.msk.f32.vlgmr.msra.gmra.mxu3 %vm110_vm0, %v33_v63 }
  0x2a   :  { %2396 = vmatpush.xpose.msk.msrb.mxu3 %vm110_vm0, %v93_v58  ;;  %2383 = vmatmul.msk.f32.vlgmr.msra.gmra.mxu2 %vm110_vm0, %v32_v61 }
  0x2b   :  { %2387 = vmatpush.xpose.msk.msrb.mxu0 %vm110_vm0, %v87_v56  ;;  %2393 = vmatpush.xpose.msk.msrb.mxu2 %vm110_vm0, %v91_v57 }
  0x2c   :  { %2380 = vmatmul.msk.f32.vlgmr.msra.gmra.mxu1 %vm110_vm0, %v31_v1  ;;  %2377 = vmatmul.msk.f32.vlgmr.msra.gmra.mxu0 %vm110_vm0, %v30_v2 }
  0x2d   :  { %2390 = vmatpush.xpose.msk.msrb.mxu1 %vm110_vm0, %v89_v59 }
  0x2e   :  { %2397 = vmatpush.xpose.msk.msrb.mxu3 %vm110_vm0, %v92_v62 }
  0x2f   :  { %2388 = vmatpush.xpose.msk.msrb.mxu0 %vm110_vm0, %v86_v60  ;;  %2394 = vmatpush.xpose.msk.msrb.mxu2 %vm110_vm0, %v90_v0 }
  0x31   :  { %2391 = vmatpush.xpose.msk.msrb.mxu1 %vm110_vm0, %v88_v6  ;;  %2398 = vmatmul.msk.f32.vlgmr.msrb.gmra.mxu3 %vm110_vm0, %v37_v12 }
  0x32   :  { %2408 = vmatpush.xpose.msk.msra.mxu3 %vm110_vm0, %v101_v5  ;;  %2395 = vmatmul.msk.f32.vlgmr.msrb.gmra.mxu2 %vm110_vm0, %v36_v10 }
  0x33   :  { %2399 = vmatpush.xpose.msk.msra.mxu0 %vm110_vm0, %v95_v3  ;;  %2405 = vmatpush.xpose.msk.msra.mxu2 %vm110_vm0, %v99_v4 }
  0x34   :  { %2389 = vmatmul.msk.f32.vlgmr.msrb.gmra.mxu0 %vm110_vm0, %v34_v14  ;;  %2392 = vmatmul.msk.f32.vlgmr.msrb.gmra.mxu1 %vm110_vm0, %v35_v15 }
  0x35   :  { %2402 = vmatpush.xpose.msk.msra.mxu1 %vm110_vm0, %v97_v7 }
  0x36   :  { %2409 = vmatpush.xpose.msk.msra.mxu3 %vm110_vm0, %v100_v11 }
  0x37   :  { %2400 = vmatpush.xpose.msk.msra.mxu0 %vm110_vm0, %v94_v8  ;;  %2406 = vmatpush.xpose.msk.msra.mxu2 %vm110_vm0, %v98_v9 }
  0x39   :  { %2403 = vmatpush.xpose.msk.msra.mxu1 %vm110_vm0, %v96_v13  ;;  %2410 = vmatmul.msk.f32.vlgmr.msra.gmra.mxu3 %vm110_vm0, %v41_v24 }
  0x3a   :  { %2420 = vmatpush.xpose.msk.msrb.mxu3 %vm110_vm0, %v109_v19  ;;  %2407 = vmatmul.msk.f32.vlgmr.msra.gmra.mxu2 %vm110_vm0, %v40_v22 }
  0x3b   :  { %2411 = vmatpush.xpose.msk.msrb.mxu0 %vm110_vm0, %v103_v16  ;;  %2417 = vmatpush.xpose.msk.msrb.mxu2 %vm110_vm0, %v107_v18 }
  0x3c   :  { %2401 = vmatmul.msk.f32.vlgmr.msra.gmra.mxu0 %vm110_vm0, %v38_v26  ;;  %2404 = vmatmul.msk.f32.vlgmr.msra.gmra.mxu1 %vm110_vm0, %v39_v27 }
  0x3d   :  { %2414 = vmatpush.xpose.msk.msrb.mxu1 %vm110_vm0, %v105_v17 }
  0x3e   :  { %2421 = vmatpush.xpose.msk.msrb.mxu3 %vm110_vm0, %v108_v23 }
  0x3f   :  { %2412 = vmatpush.xpose.msk.msrb.mxu0 %vm110_vm0, %v102_v20  ;;  %2418 = vmatpush.xpose.msk.msrb.mxu2 %vm110_vm0, %v106_v25 }
  0x41   :  { %2415 = vmatpush.xpose.msk.msrb.mxu1 %vm110_vm0, %v104_v21  ;;  %2422 = vmatmul.msk.f32.vlgmr.msrb.gmra.mxu3 %vm110_vm0, %v45_v29 }
  0x42   :  { %2419 = vmatmul.msk.f32.vlgmr.msrb.gmra.mxu2 %vm110_vm0, %v44_v28 }
  0x44   :  { %2413 = vmatmul.msk.f32.vlgmr.msrb.gmra.mxu0 %vm110_vm0, %v42_v30  ;;  %2416 = vmatmul.msk.f32.vlgmr.msrb.gmra.mxu1 %vm110_vm0, %v43_v31 }
  0x86   :  { %v137_v32 = vpop.f32.mrf.mxu0 }
  0x87   :  { %v3083_v33 = vmul.f32 0.5, %v137_v32 }
  0x89   :  { %v166_v34 = vpop.f32.mrf.mxu1  ;;  %v1072_v35 = vsel %vm1071_vm1, %v3083_v33, -inf }
  0x8a   :  { %1073 = vmax.xlane.f32.xlu1 %v1072_v35  ;;  %v3087_v36 = vmul.f32 0.5, %v166_v34 }
  0x8c   :  { %v224_v39 = vpop.f32.mrf.mxu3  ;;  %v1075_v41 = vsel %vm1071_vm1, %v3087_v36, -inf }
  0x8d   :  { %v195_v37 = vpop.f32.mrf.mxu2  ;;  %v3095_v44 = vmul.f32 0.5, %v224_v39 }
  0x8e   :  { %v3089_v38 = vmul.f32 0.5, %v195_v37 }
  0x8f   :  { %v1081_v49 = vsel %vm1071_vm1, %v3095_v44, -inf }
  0x90   :  { %v1078_v40 = vsel %vm1071_vm1, %v3089_v38, -inf }
  0x91   :  { %v253_v42 = vpop.f32.mrf.mxu0  ;;  %1079 = vmax.xlane.f32.xlu0 %v1078_v40  ;;  %v282_v43 = vpop.f32.mrf.mxu1 }
  0x92   :  { %1076 = vmax.xlane.f32.xlu1 %v1075_v41  ;;  %v3097_v45 = vmul.f32 0.5, %v282_v43  ;;  %v3107_v54 = vmul.f32 0.5, %v253_v42 }
  0x94   :  { %v340_v48 = vpop.f32.mrf.mxu3  ;;  %v1087_v51 = vsel %vm1071_vm1, %v3097_v45, -inf  ;;  %v1084_v60 = vsel %vm1071_vm1, %v3107_v54, -inf }
  0x95   :  { %v311_v46 = vpop.f32.mrf.mxu2  ;;  %v3109_v55 = vmul.f32 0.5, %v340_v48 }
  0x96   :  { %v3099_v47 = vmul.f32 0.5, %v311_v46 }
  0x97   :  { %v1093_v59 = vsel %vm1071_vm1, %v3109_v55, -inf }
  0x98   :  { %v1090_v50 = vsel %vm1071_vm1, %v3099_v47, -inf }
  0x99   :  { %1082 = vmax.xlane.f32.xlu0 %v1081_v49  ;;  %1091 = vmax.xlane.f32.xlu2 %v1090_v50  ;;  %v369_v52 = vpop.f32.mrf.mxu0  ;;  %v398_v53 = vpop.f32.mrf.mxu1 }
  0x9a   :  { %1088 = vmax.xlane.f32.xlu1 %v1087_v51  ;;  %v3111_v56 = vmul.f32 0.5, %v369_v52  ;;  %v3119_v0 = vmul.f32 0.5, %v398_v53 }
  0x9c   :  { %v456_v58 = vpop.f32.mrf.mxu3  ;;  %v1096_v61 = vsel %vm1071_vm1, %v3111_v56, -inf  ;;  %v1099_v5 = vsel %vm1071_vm1, %v3119_v0, -inf }
  0x9d   :  { %v427_v57 = vpop.f32.mrf.mxu2  ;;  %v3121_v1 = vmul.f32 0.5, %v456_v58 }
  0x9e   :  { %v3131_v9 = vmul.f32 0.5, %v427_v57 }
  0x9f   :  { %v1105_v6 = vsel %vm1071_vm1, %v3121_v1, -inf }
  0xa0   :  { %v1102_v13 = vsel %vm1071_vm1, %v3131_v9, -inf }
  0xa1   :  { %1094 = vmax.xlane.f32.xlu2 %v1093_v59  ;;  %1085 = vmax.xlane.f32.xlu0 %v1084_v60  ;;  %v514_v62 = vpop.f32.mrf.mxu1  ;;  %v485_v63 = vpop.f32.mrf.mxu0 }
  0xa2   :  { %1097 = vmax.xlane.f32.xlu1 %v1096_v61  ;;  %v3133_v10 = vmul.f32 0.5, %v514_v62  ;;  %v3143_v17 = vmul.f32 0.5, %v485_v63 }
  0xa4   :  { %v572_v2 = vpop.f32.mrf.mxu3  ;;  %v1111_v14 = vsel %vm1071_vm1, %v3133_v10, -inf  ;;  %v1108_v23 = vsel %vm1071_vm1, %v3143_v17, -inf }
  0xa5   :  { %v3123_v3 = vmul.f32 0.5, %v572_v2  ;;  %v543_v4 = vpop.f32.mrf.mxu2 }
  0xa6   :  { %v3145_v18 = vmul.f32 0.5, %v543_v4 }
  0xa7   :  { %v1117_v7 = vsel %vm1071_vm1, %v3123_v3, -inf }
  0xa8   :  { %v1114_v22 = vsel %vm1071_vm1, %v3145_v18, -inf }
  0xa9   :  { %1100 = vmax.xlane.f32.xlu2 %v1099_v5  ;;  %1106 = vmax.xlane.f32.xlu0 %v1105_v6  ;;  %v630_v8 = vpop.f32.mrf.mxu1  ;;  %v601_v12 = vpop.f32.mrf.mxu0 }
  0xaa   :  { %1118 = vmax.xlane.f32.xlu1 %v1117_v7  ;;  %v3135_v11 = vmul.f32 0.5, %v630_v8  ;;  %v3157_v26 = vmul.f32 0.5, %v601_v12 }
  0xac   :  { %v1123_v15 = vsel %vm1071_vm1, %v3135_v11, -inf  ;;  %v688_v20 = vpop.f32.mrf.mxu3  ;;  %v1120_v32 = vsel %vm1071_vm1, %v3157_v26, -inf }
  0xad   :  { %v659_v16 = vpop.f32.mrf.mxu2  ;;  %v3155_v25 = vmul.f32 0.5, %v688_v20 }
  0xae   :  { %v3147_v19 = vmul.f32 0.5, %v659_v16 }
  0xaf   :  { %v1129_v29 = vsel %vm1071_vm1, %v3155_v25, -inf }
  0xb0   :  { %v1126_v24 = vsel %vm1071_vm1, %v3147_v19, -inf }
  0xb1   :  { %1103 = vmax.xlane.f32.xlu2 %v1102_v13  ;;  %1112 = vmax.xlane.f32.xlu0 %v1111_v14  ;;  %v717_v21 = vpop.f32.mrf.mxu0  ;;  %v746_v30 = vpop.f32.mrf.mxu1 }
  0xb2   :  { %1124 = vmax.xlane.f32.xlu1 %v1123_v15  ;;  %v3159_v27 = vmul.f32 0.5, %v717_v21  ;;  %v3167_v37 = vmul.f32 0.5, %v746_v30 }
  0xb4   :  { %v804_v31 = vpop.f32.mrf.mxu3  ;;  %v1132_v34 = vsel %vm1071_vm1, %v3159_v27, -inf  ;;  %v1135_v41 = vsel %vm1071_vm1, %v3167_v37, -inf }
  0xb5   :  { %v775_v28 = vpop.f32.mrf.mxu2  ;;  %v3169_v39 = vmul.f32 0.5, %v804_v31 }
  0xb6   :  { %v3181_v51 = vmul.f32 0.5, %v775_v28 }
  0xb7   :  { %v1141_v42 = vsel %vm1071_vm1, %v3169_v39, -inf }
  0xb8   :  { %v1138_v58 = vsel %vm1071_vm1, %v3181_v51, -inf }
  0xb9   :  { %1115 = vmax.xlane.f32.xlu0 %v1114_v22  ;;  %1109 = vmax.xlane.f32.xlu2 %v1108_v23  ;;  %v833_v35 = vpop.f32.mrf.mxu0  ;;  %v862_v46 = vpop.f32.mrf.mxu1 }
  0xba   :  { %1127 = vmax.xlane.f32.xlu1 %v1126_v24  ;;  %v3171_v40 = vmul.f32 0.5, %v833_v35  ;;  %v3193_v62 = vmul.f32 0.5, %v862_v46 }
  0xbc   :  { %v1144_v48 = vsel %vm1071_vm1, %v3171_v40, -inf  ;;  %v920_v49 = vpop.f32.mrf.mxu3  ;;  %v1147_v5 = vsel %vm1071_vm1, %v3193_v62, -inf }
  0xbd   :  { %v891_v43 = vpop.f32.mrf.mxu2  ;;  %v3183_v52 = vmul.f32 0.5, %v920_v49 }
  0xbe   :  { %v3179_v50 = vmul.f32 0.5, %v891_v43 }
  0xbf   :  { %v1153_v59 = vsel %vm1071_vm1, %v3183_v52, -inf }
  0xc0   :  { %v1150_v53 = vsel %vm1071_vm1, %v3179_v50, -inf }
  0xc1   :  { %1130 = vmax.xlane.f32.xlu2 %v1129_v29  ;;  %1121 = vmax.xlane.f32.xlu0 %v1120_v32  ;;  %v949_v57 = vpop.f32.mrf.mxu0  ;;  %v978_v60 = vpop.f32.mrf.mxu1 }
  0xc2   :  { %1133 = vmax.xlane.f32.xlu1 %v1132_v34  ;;  %v3191_v61 = vmul.f32 0.5, %v949_v57  ;;  %v3195_v63 = vmul.f32 0.5, %v978_v60 }
  0xc4   :  { %v1156_v2 = vsel %vm1071_vm1, %v3191_v61, -inf  ;;  %v1159_v6 = vsel %vm1071_vm1, %v3195_v63, -inf  ;;  %v1036_v7 = vpop.f32.mrf.mxu3 }
  0xc5   :  { %v1007_v4 = vpop.f32.mrf.mxu2  ;;  %v3205_v12 = vmul.f32 0.5, %v1036_v7 }
  0xc6   :  { %v3203_v8 = vmul.f32 0.5, %v1007_v4 }
  0xc7   :  { %v1165_v14 = vsel %vm1071_vm1, %v3205_v12, -inf }
  0xc8   :  { %v1162_v13 = vsel %vm1071_vm1, %v3203_v8, -inf }
  0xc9   :  { %1136 = vmax.xlane.f32.xlu2 %v1135_v41  ;;  %1142 = vmax.xlane.f32.xlu0 %v1141_v42 }
  0xca   :  { %1145 = vmax.xlane.f32.xlu1 %v1144_v48 }
  0xd1   :  { %1139 = vmax.xlane.f32.xlu2 %v1138_v58  ;;  %1151 = vmax.xlane.f32.xlu0 %v1150_v53 }
  0xd2   :  { %1154 = vmax.xlane.f32.xlu1 %v1153_v59 }
  0xd9   :  { %1148 = vmax.xlane.f32.xlu2 %v1147_v5  ;;  %1157 = vmax.xlane.f32.xlu0 %v1156_v2 }
  0xda   :  { %1160 = vmax.xlane.f32.xlu1 %v1159_v6 }
  0xe1   :  { %1163 = vmax.xlane.f32.xlu0 %v1162_v13 }
  0xe2   :  { %1166 = vmax.xlane.f32.xlu1 %v1165_v14 }
  0xfd   :  { %v1074_v15 = vpop.xlane.xlu1 %1073 }
  0xfe   :  { %v1168_v16 = vsub.f32 %v3083_v33, %v1074_v15 }
 0x100   :  { %v1200_v20 = vmul.f32 1.442695, %v1168_v16 }
 0x102   :  { %2487 = vpow2.f32 %v1200_v20 }
 0x104   :  { %v1080_v21 = vpop.xlane.xlu0 %1079 }
 0x105   :  { %v1170_v22 = vsub.f32 %v3089_v38, %v1080_v21  ;;  %v1077_v23 = vpop.xlane.xlu1 %1076 }
 0x106   :  { %v1169_v28 = vsub.f32 %v3087_v36, %v1077_v23 }
 0x107   :  { %v1204_v24 = vmul.f32 1.442695, %v1170_v22 }
 0x108   :  { %v3214_v29 = vpop.eup %2487  ;;  %v1202_v30 = vmul.f32 1.442695, %v1169_v28 }
 0x109   :  { %2489 = vpow2.f32 %v1204_v24  ;;  %v1264_v31 = vsel %vm1071_vm1, %v3214_v29, 0.0 }
 0x10a   :  { %2491 = vpow2.f32 %v1202_v30  ;;  %1265 = vadd.xlane.f32.xlu2 %v1264_v31 }
 0x10c   :  { %v1083_v32 = vpop.xlane.xlu0 %1082  ;;  %v1092_v33 = vpop.xlane.xlu2 %1091 }
 0x10d   :  { %v1171_v34 = vsub.f32 %v3095_v44, %v1083_v32  ;;  %v1174_v35 = vsub.f32 %v3099_v47, %v1092_v33  ;;  %v1089_v38 = vpop.xlane.xlu1 %1088 }
 0x10e   :  { %v1173_v46 = vsub.f32 %v3097_v45, %v1089_v38 }
 0x10f   :  { %v3220_v41 = vpop.eup %2489  ;;  %v1206_v42 = vmul.f32 1.442695, %v1171_v34  ;;  %v1212_v36 = vmul.f32 1.442695, %v1174_v35 }
 0x110   :  { %v3222_v43 = vpop.eup %2491  ;;  %v1270_v48 = vsel %vm1071_vm1, %v3220_v41, 0.0  ;;  %v1210_v53 = vmul.f32 1.442695, %v1173_v46 }
 0x111   :  { %2493 = vpow2.f32 %v1206_v42  ;;  %v1267_v49 = vsel %vm1071_vm1, %v3222_v43, 0.0 }
 0x112   :  { %2495 = vpow2.f32 %v1212_v36  ;;  %1271 = vadd.xlane.f32.xlu2 %v1270_v48  ;;  %1268 = vadd.xlane.f32.xlu0 %v1267_v49 }
 0x113   :  { %2497 = vpow2.f32 %v1210_v53 }
 0x114   :  { %v1095_v44 = vpop.xlane.xlu2 %1094  ;;  %v1086_v47 = vpop.xlane.xlu0 %1085 }
 0x115   :  { %v1172_v57 = vsub.f32 %v3107_v54, %v1086_v47  ;;  %v1098_v58 = vpop.xlane.xlu1 %1097  ;;  %v1175_v60 = vsub.f32 %v3109_v55, %v1095_v44 }
 0x116   :  { %v1176_v4 = vsub.f32 %v3111_v56, %v1098_v58 }
 0x117   :  { %v3230_v59 = vpop.eup %2493  ;;  %v1208_v45 = vmul.f32 1.442695, %v1172_v57  ;;  %v1214_v54 = vmul.f32 1.442695, %v1175_v60 }
 0x118   :  { %v3233_v2 = vpop.eup %2495  ;;  %v1273_v6 = vsel %vm1071_vm1, %v3230_v59, 0.0  ;;  %v1216_v7 = vmul.f32 1.442695, %v1176_v4 }
 0x119   :  { %v1282_v5 = vsel %vm1071_vm1, %v3233_v2, 0.0  ;;  %2499 = vpow2.f32 %v1208_v45  ;;  %v3241_v16 = vpop.eup %2497 }
 0x11a   :  { %1283 = vadd.xlane.f32.xlu1 %v1282_v5  ;;  %1274 = vadd.xlane.f32.xlu0 %v1273_v6  ;;  %2501 = vpow2.f32 %v1214_v54 }
 0x11b   :  { %2503 = vpow2.f32 %v1216_v7 }
 0x11c   :  { %v1101_v13 = vpop.xlane.xlu2 %1100  ;;  %v1107_v14 = vpop.xlane.xlu0 %1106 }
 0x11d   :  { %v1177_v55 = vsub.f32 %v3119_v0, %v1101_v13  ;;  %v1119_v15 = vpop.xlane.xlu1 %1118  ;;  %v1179_v20 = vsub.f32 %v3121_v1, %v1107_v14  ;;  %v1279_v0 = vsel %vm1071_vm1, %v3241_v16, 0.0 }
 0x11e   :  { %v1183_v22 = vsub.f32 %v3123_v3, %v1119_v15 }
 0x11f   :  { %v1218_v56 = vmul.f32 1.442695, %v1177_v55  ;;  %v3244_v21 = vpop.eup %2499  ;;  %v1222_v24 = vmul.f32 1.442695, %v1179_v20 }
 0x120   :  { %v1276_v23 = vsel %vm1071_vm1, %v3244_v21, 0.0  ;;  %v1230_v28 = vmul.f32 1.442695, %v1183_v22  ;;  %v3251_v32 = vpop.eup %2501 }
 0x121   :  { %2505 = vpow2.f32 %v1218_v56  ;;  %1277 = vadd.xlane.f32.xlu2 %v1276_v23  ;;  %v3254_v33 = vpop.eup %2503  ;;  %v1285_v46 = vsel %vm1071_vm1, %v3251_v32, 0.0 }
 0x122   :  { %1280 = vadd.xlane.f32.xlu0 %v1279_v0  ;;  %2507 = vpow2.f32 %v1222_v24 }
 0x123   :  { %2509 = vpow2.f32 %v1230_v28 }
 0x124   :  { %v1104_v30 = vpop.xlane.xlu2 %1103  ;;  %v1113_v31 = vpop.xlane.xlu0 %1112 }
 0x125   :  { %v1178_v1 = vsub.f32 %v3131_v9, %v1104_v30  ;;  %v1125_v3 = vpop.xlane.xlu1 %1124  ;;  %v1181_v38 = vsub.f32 %v3133_v10, %v1113_v31  ;;  %v1288_v9 = vsel %vm1071_vm1, %v3254_v33, 0.0 }
 0x126   :  { %v1185_v36 = vsub.f32 %v3135_v11, %v1125_v3 }
 0x127   :  { %v3256_v34 = vpop.eup %2505  ;;  %v1220_v35 = vmul.f32 1.442695, %v1178_v1  ;;  %v1226_v48 = vmul.f32 1.442695, %v1181_v38 }
 0x128   :  { %v1291_v42 = vsel %vm1071_vm1, %v3256_v34, 0.0  ;;  %v3266_v47 = vpop.eup %2507  ;;  %v1234_v10 = vmul.f32 1.442695, %v1185_v36 }
 0x129   :  { %2511 = vpow2.f32 %v1220_v35  ;;  %1292 = vadd.xlane.f32.xlu1 %v1291_v42  ;;  %1286 = vadd.xlane.f32.xlu2 %v1285_v46  ;;  %v3269_v57 = vpop.eup %2509  ;;  %v1297_v6 = vsel %vm1071_vm1, %v3266_v47, 0.0 }
 0x12a   :  { %1289 = vadd.xlane.f32.xlu0 %v1288_v9  ;;  %2513 = vpow2.f32 %v1226_v48 }
 0x12b   :  { %2515 = vpow2.f32 %v1234_v10 }
 0x12c   :  { %v1116_v49 = vpop.xlane.xlu0 %1115  ;;  %v1110_v44 = vpop.xlane.xlu2 %1109 }
 0x12d   :  { %v1180_v53 = vsub.f32 %v3143_v17, %v1110_v44  ;;  %v1128_v11 = vpop.xlane.xlu1 %1127  ;;  %v1182_v60 = vsub.f32 %v3145_v18, %v1116_v49  ;;  %v1309_v17 = vsel %vm1071_vm1, %v3269_v57, 0.0 }
 0x12e   :  { %v1186_v4 = vsub.f32 %v3147_v19, %v1128_v11 }
 0x12f   :  { %v3271_v58 = vpop.eup %2511  ;;  %v1224_v45 = vmul.f32 1.442695, %v1180_v53  ;;  %v1228_v54 = vmul.f32 1.442695, %v1182_v60 }
 0x130   :  { %v1294_v5 = vsel %vm1071_vm1, %v3271_v58, 0.0  ;;  %v1236_v18 = vmul.f32 1.442695, %v1186_v4  ;;  %v3282_v14 = vpop.eup %2513 }
 0x131   :  { %1295 = vadd.xlane.f32.xlu1 %v1294_v5  ;;  %2517 = vpow2.f32 %v1224_v45  ;;  %1298 = vadd.xlane.f32.xlu2 %v1297_v6  ;;  %v3284_v15 = vpop.eup %2515  ;;  %v1303_v0 = vsel %vm1071_vm1, %v3282_v14, 0.0 }
 0x132   :  { %1310 = vadd.xlane.f32.xlu0 %v1309_v17  ;;  %2519 = vpow2.f32 %v1228_v54  ;;  %v1315_v24 = vsel %vm1071_vm1, %v3284_v15, 0.0 }
 0x133   :  { %2521 = vpow2.f32 %v1236_v18 }
 0x134   :  { %v1131_v7 = vpop.xlane.xlu2 %1130  ;;  %v1122_v13 = vpop.xlane.xlu0 %1121 }
 0x135   :  { %v1187_v19 = vsub.f32 %v3155_v25, %v1131_v7  ;;  %v1134_v55 = vpop.xlane.xlu1 %1133  ;;  %v1184_v20 = vsub.f32 %v3157_v26, %v1122_v13 }
 0x136   :  { %v1188_v23 = vsub.f32 %v3159_v27, %v1134_v55 }
 0x137   :  { %v1238_v56 = vmul.f32 1.442695, %v1187_v19  ;;  %v3287_v22 = vpop.eup %2517  ;;  %v1232_v28 = vmul.f32 1.442695, %v1184_v20 }
 0x138   :  { %v1300_v25 = vsel %vm1071_vm1, %v3287_v22, 0.0  ;;  %v1240_v26 = vmul.f32 1.442695, %v1188_v23  ;;  %v3296_v1 = vpop.eup %2519 }
 0x139   :  { %2523 = vpow2.f32 %v1238_v56  ;;  %1304 = vadd.xlane.f32.xlu2 %v1303_v0  ;;  %1301 = vadd.xlane.f32.xlu1 %v1300_v25  ;;  %v3299_v3 = vpop.eup %2521  ;;  %v1306_v9 = vsel %vm1071_vm1, %v3296_v1, 0.0 }
 0x13a   :  { %1316 = vadd.xlane.f32.xlu0 %v1315_v24  ;;  %2525 = vpow2.f32 %v1232_v28 }
 0x13b   :  { %2527 = vpow2.f32 %v1240_v26 }
 0x13c   :  { %v1137_v30 = vpop.xlane.xlu2 %1136  ;;  %v1143_v31 = vpop.xlane.xlu0 %1142 }
 0x13d   :  { %v1189_v27 = vsub.f32 %v3167_v37, %v1137_v30  ;;  %v1146_v35 = vpop.xlane.xlu1 %1145  ;;  %v1191_v36 = vsub.f32 %v3169_v39, %v1143_v31  ;;  %v1318_v37 = vsel %vm1071_vm1, %v3299_v3, 0.0 }
 0x13e   :  { %v1192_v45 = vsub.f32 %v3171_v40, %v1146_v35 }
 0x13f   :  { %v3301_v38 = vpop.eup %2523  ;;  %v1242_v42 = vmul.f32 1.442695, %v1189_v27  ;;  %v1246_v48 = vmul.f32 1.442695, %v1191_v36 }
 0x140   :  { %v1321_v46 = vsel %vm1071_vm1, %v3301_v38, 0.0  ;;  %v3310_v10 = vpop.eup %2525  ;;  %v1248_v40 = vmul.f32 1.442695, %v1192_v45 }
 0x141   :  { %2529 = vpow2.f32 %v1242_v42  ;;  %1307 = vadd.xlane.f32.xlu2 %v1306_v9  ;;  %1322 = vadd.xlane.f32.xlu1 %v1321_v46  ;;  %v3313_v53 = vpop.eup %2527 }
 0x142   :  { %1319 = vadd.xlane.f32.xlu0 %v1318_v37  ;;  %2531 = vpow2.f32 %v1246_v48  ;;  %v1324_v18 = vsel %vm1071_vm1, %v3313_v53, 0.0 }
 0x144   :  { %v1140_v49 = vpop.xlane.xlu2 %1139  ;;  %v1152_v44 = vpop.xlane.xlu0 %1151 }
 0x145   :  { %v1190_v39 = vsub.f32 %v3181_v51, %v1140_v49  ;;  %v1155_v11 = vpop.xlane.xlu1 %1154  ;;  %v1194_v6 = vsub.f32 %v3179_v50, %v1152_v44  ;;  %v1312_v51 = vsel %vm1071_vm1, %v3310_v10, 0.0 }
 0x146   :  { %v1195_v5 = vsub.f32 %v3183_v52, %v1155_v11 }
 0x147   :  { %v3315_v60 = vpop.eup %2529  ;;  %v1244_v4 = vmul.f32 1.442695, %v1190_v39  ;;  %v1252_v52 = vmul.f32 1.442695, %v1194_v6  ;;  %v2616_v6 = vld [vmem:[%s3883_s1 + $0x18] sm:$0x3] }
 0x148   :  { %v1327_v17 = vsel %vm1071_vm1, %v3315_v60, 0.0  ;;  %v1254_v54 = vmul.f32 1.442695, %v1195_v5  ;;  %v3326_v50 = vpop.eup %2531  ;;  %v2615_v5 = vld [vmem:[%s3883_s1 + $0x8] sm:$0x3]  ;;  %2425 = vmatpush.msk.msra.mxu1 %vm1492_vm2, %v2616_v6 }
 0x149   :  { %2533 = vpow2.f32 %v1244_v4  ;;  %1313 = vadd.xlane.f32.xlu2 %v1312_v51  ;;  %1328 = vadd.xlane.f32.xlu1 %v1327_v17  ;;  %v1333_v0 = vsel %vm1071_vm1, %v3326_v50, 0.0  ;;  %v2618_v51 = vld [vmem:[%s3883_s1] sm:$0xff] }
 0x14a   :  { %2535 = vpow2.f32 %v1254_v54  ;;  %1325 = vadd.xlane.f32.xlu0 %v1324_v18  ;;  %2423 = vmatpush.msk.msra.mxu0 %vm1492_vm2, %v2615_v5  ;;  %v2617_v54 = vld [vmem:[%s3883_s1 + $0x28] sm:$0x3]  ;;  %v2619_v18 = vld [vmem:[%s3883_s1 + $0x10] sm:$0xff] }
 0x14b   :  { %2537 = vpow2.f32 %v1248_v40  ;;  %2427 = vmatpush.msk.msra.mxu2 %vm1492_vm2, %v2617_v54  ;;  %1535 = vmatpush.msra.mxu1 %v2619_v18  ;;  %v2620_v40 = vld [vmem:[%s3883_s1 + $0x20] sm:$0xff]  ;;  %v2633_v54 = vld [vmem:[%s3883_s1 + $0xa8] sm:$0x3]  ;;  %v1430_v18 = vld [vmem:[%s3885_s2 + $0x18] sm:$0xf] }
 0x14c   :  { %v1158_v7 = vpop.xlane.xlu0 %1157  ;;  %v1149_v13 = vpop.xlane.xlu2 %1148  ;;  %2539 = vpow2.f32 %v1252_v52  ;;  %1510 = vmatpush.msra.mxu0 %v2618_v51  ;;  %v2621_v52 = vld [vmem:[%s3883_s1 + $0x38] sm:$0x3] }
 0x14d   :  { %v1161_v19 = vpop.xlane.xlu1 %1160  ;;  %v1193_v56 = vsub.f32 %v3193_v62, %v1149_v13  ;;  %v1196_v36 = vsub.f32 %v3191_v61, %v1158_v7  ;;  %1560 = vmatpush.msra.mxu2 %v2620_v40  ;;  %2429 = vmatpush.msk.msra.mxu3 %vm1492_vm2, %v2621_v52  ;;  %v2622_v7 = vld [vmem:[%s3883_s1 + $0x68] sm:$0x3]  ;;  %v2634_v51 = vld [vmem:[%s3883_s1 + $0x98] sm:$0x3]  ;;  %v1427_v52 = vld [vmem:[%s3885_s2 + $0xc] sm:$0xf] }
 0x14e   :  { %v1197_v27 = vsub.f32 %v3195_v63, %v1161_v19  ;;  %v2623_v13 = vld [vmem:[%s3883_s1 + $0x48] sm:$0x3]  ;;  %v2624_v19 = vld [vmem:[%s3883_s1 + $0x58] sm:$0x3] }
 0x14f   :  { %v3328_v55 = vpop.eup %2533  ;;  %v1250_v24 = vmul.f32 1.442695, %v1193_v56  ;;  %v1256_v48 = vmul.f32 1.442695, %v1196_v36  ;;  %2435 = vmatpush.msk.msrb.mxu2 %vm1492_vm2, %v2622_v7  ;;  %2431 = vmatpush.msk.msrb.mxu0 %vm1492_vm2, %v2623_v13  ;;  %v2625_v56 = vld [vmem:[%s3883_s1 + $0x30] sm:$0xff]  ;;  %v2635_v13 = vld [vmem:[%s3883_s1 + $0xa0] sm:$0xff] }
 0x150   :  { %v1330_v20 = vsel %vm1071_vm1, %v3328_v55, 0.0  ;;  %v3333_v23 = vpop.eup %2535  ;;  %2433 = vmatpush.msk.msrb.mxu1 %vm1492_vm2, %v2624_v19  ;;  %1585 = vmatpush.msra.mxu3 %v2625_v56 }
 0x151   :  { %1334 = vadd.xlane.f32.xlu2 %v1333_v0  ;;  %1331 = vadd.xlane.f32.xlu1 %v1330_v20  ;;  %v1345_v25 = vsel %vm1071_vm1, %v3333_v23, 0.0  ;;  %v3339_v26 = vpop.eup %2537  ;;  %2541 = vpow2.f32 %v1250_v24  ;;  %v2626_v20 = vld [vmem:[%s3883_s1 + $0x60] sm:$0xff]  ;;  %v2629_v24 = vld [vmem:[%s3883_s1 + $0x78] sm:$0x3] }
 0x152   :  { %1346 = vadd.xlane.f32.xlu0 %v1345_v25  ;;  %v3342_v30 = vpop.eup %2539  ;;  %v1336_v37 = vsel %vm1071_vm1, %v3339_v26, 0.0  ;;  %1660 = vmatpush.msrb.mxu2 %v2626_v20  ;;  %v2627_v0 = vld [vmem:[%s3883_s1 + $0x40] sm:$0xff]  ;;  %v2628_v25 = vld [vmem:[%s3883_s1 + $0x50] sm:$0xff] }
 0x153   :  { %v1342_v9 = vsel %vm1071_vm1, %v3342_v30, 0.0  ;;  %1610 = vmatpush.msrb.mxu0 %v2627_v0  ;;  %1635 = vmatpush.msrb.mxu1 %v2628_v25  ;;  %v2636_v20 = vld [vmem:[%s3883_s1 + $0x90] sm:$0xff]  ;;  %v2637_v25 = vld [vmem:[%s3883_s1 + $0xb8] sm:$0x3] }
 0x154   :  { %v1164_v28 = vpop.xlane.xlu0 %1163  ;;  %2437 = vmatpush.msk.msrb.mxu3 %vm1492_vm2, %v2629_v24 }
 0x155   :  { %v1198_v62 = vsub.f32 %v3203_v8, %v1164_v28  ;;  %v1167_v31 = vpop.xlane.xlu1 %1166  ;;  %v1258_v8 = vmul.f32 1.442695, %v1197_v27  ;;  %v2630_v28 = vld [vmem:[%s3883_s1 + $0x70] sm:$0xff]  ;;  %v1424_v27 = vld [vmem:[%s3885_s2] sm:$0xf] }
 0x156   :  { %v1199_v42 = vsub.f32 %v3205_v12, %v1167_v31  ;;  %1685 = vmatpush.msrb.mxu3 %v2630_v28  ;;  %v1428_v28 = vld [vmem:[%s3885_s2 + $0x10] sm:$0xf] }
 0x157   :  { %v1260_v35 = vmul.f32 1.442695, %v1198_v62  ;;  %v3351_v63 = vpop.eup %2541 }
 0x158   :  { %v1262_v46 = vmul.f32 1.442695, %v1199_v42  ;;  %v1339_v44 = vsel %vm1071_vm1, %v3351_v63, 0.0 }
 0x159   :  { %2543 = vpow2.f32 %v1260_v35  ;;  %1343 = vadd.xlane.f32.xlu2 %v1342_v9  ;;  %1337 = vadd.xlane.f32.xlu1 %v1336_v37  ;;  %v2631_v9 = vld [vmem:[%s3883_s1 + $0x88] sm:$0x3] }
 0x15a   :  { %2545 = vpow2.f32 %v1262_v46 }
 0x15b   :  { %2547 = vpow2.f32 %v1258_v8  ;;  %v1426_v8 = vld [vmem:[%s3885_s2 + $0x8] sm:$0xf] }
 0x15c   :  { %2549 = vpow2.f32 %v1256_v48  ;;  %v2632_v48 = vld [vmem:[%s3883_s1 + $0x80] sm:$0xff] }
 0x15f   :  { %v3353_v49 = vpop.eup %2543 }
 0x160   :  { %v1354_v61 = vsel %vm1071_vm1, %v3353_v49, 0.0  ;;  %v3357_v12 = vpop.eup %2545 }
 0x161   :  { %1355 = vadd.xlane.f32.xlu0 %v1354_v61  ;;  %1340 = vadd.xlane.f32.xlu2 %v1339_v44  ;;  %v1357_v39 = vsel %vm1071_vm1, %v3357_v12, 0.0  ;;  %v3363_v11 = vpop.eup %2547 }
 0x162   :  { %1358 = vadd.xlane.f32.xlu1 %v1357_v39  ;;  %v3365_v45 = vpop.eup %2549  ;;  %v1351_v4 = vsel %vm1071_vm1, %v3363_v11, 0.0  ;;  %v1425_v39 = vld [vmem:[%s3885_s2 + $0x4] sm:$0xf] }
 0x163   :  { %v1348_v17 = vsel %vm1071_vm1, %v3365_v45, 0.0 }
 0x169   :  { %1352 = vadd.xlane.f32.xlu0 %v1351_v4  ;;  %1349 = vadd.xlane.f32.xlu2 %v1348_v17 }
 0x17d   :  { %v1266_v62 = vpop.xlane.xlu2 %1265 }
 0x17e   :  { %2551 = vrcp.f32 %v1266_v62 }
 0x184   :  { %v2552_v31 = vpop.eup %2551 }
 0x185   :  { %v1392_v35 = vmul.f32 %v2552_v31, %v3214_v29  ;;  %v1272_v42 = vpop.xlane.xlu2 %1271  ;;  %v1269_v36 = vpop.xlane.xlu0 %1268 }
 0x186   :  { %2553 = vrcp.f32 %v1272_v42 }
 0x187   :  { %v1456_v46 = vmul.f32 %v1424_v27, %v1392_v35  ;;  %2555 = vrcp.f32 %v1269_v36  ;;  %v1429_v35 = vld [vmem:[%s3885_s2 + $0x14] sm:$0xf] }
 0x188   :  { %v2639_v36 = vld [vmem:[%s3883_s1 + $0xb0] sm:$0xff] }
 0x189   :  { %2424 = vmatmul.msk.f32.vlgmr.msra.gmra.mxu0 %vm1488_vm3, %v1456_v46  ;;  %v2640_v46 = vld [vmem:[%s3883_s1 + $0xe0] sm:$0xff] }
 0x18a   :  { %2439 = vmatpush.msk.msra.mxu0 %vm1492_vm2, %v2631_v9 }
 0x18c   :  { %v2554_v37 = vpop.eup %2553  ;;  %1710 = vmatpush.msra.mxu0 %v2632_v48 }
 0x18d   :  { %v1284_v29 = vpop.xlane.xlu1 %1283  ;;  %v2556_v61 = vpop.eup %2555  ;;  %v1394_v44 = vmul.f32 %v2554_v37, %v3220_v41 }
 0x18e   :  { %2557 = vrcp.f32 %v1284_v29  ;;  %v1275_v4 = vpop.xlane.xlu0 %1274  ;;  %v1393_v5 = vmul.f32 %v2556_v61, %v3222_v43  ;;  %v2641_v29 = vld [vmem:[%s3883_s1 + $0xc8] sm:$0x3] }
 0x18f   :  { %2559 = vrcp.f32 %v1275_v4  ;;  %v1458_v6 = vmul.f32 %v1426_v8, %v1394_v44  ;;  %v1431_v44 = vld [vmem:[%s3885_s2 + $0x1c] sm:$0xf] }
 0x190   :  { %v1457_v17 = vmul.f32 %v1425_v39, %v1393_v5  ;;  %v2643_v5 = vld [vmem:[%s3883_s1 + $0xc0] sm:$0xff] }
 0x191   :  { %2428 = vmatmul.msk.f32.vlgmr.msra.gmra.mxu2 %vm1488_vm3, %v1458_v6 }
 0x192   :  { %2426 = vmatmul.msk.f32.vlgmr.msra.gmra.mxu1 %vm1488_vm3, %v1457_v17  ;;  %2443 = vmatpush.msk.msra.mxu2 %vm1492_vm2, %v2633_v54  ;;  %v1433_v54 = vld [vmem:[%s3885_s2 + $0x24] sm:$0xf] }
 0x193   :  { %2441 = vmatpush.msk.msra.mxu1 %vm1492_vm2, %v2634_v51 }
 0x194   :  { %v2558_v41 = vpop.eup %2557  ;;  %v1278_v7 = vpop.xlane.xlu2 %1277  ;;  %1760 = vmatpush.msra.mxu2 %v2635_v13  ;;  %v1434_v13 = vld [vmem:[%s3885_s2 + $0x28] sm:$0xf] }
 0x195   :  { %v2560_v43 = vpop.eup %2559  ;;  %v1398_v40 = vmul.f32 %v2558_v41, %v3233_v2  ;;  %2561 = vrcp.f32 %v1278_v7  ;;  %1735 = vmatpush.msra.mxu1 %v2636_v20  ;;  %v1432_v41 = vld [vmem:[%s3885_s2 + $0x20] sm:$0xf]  ;;  %v1435_v20 = vld [vmem:[%s3885_s2 + $0x2c] sm:$0xf] }
 0x196   :  { %v1395_v19 = vmul.f32 %v2560_v43, %v3230_v59  ;;  %v1281_v56 = vpop.xlane.xlu0 %1280  ;;  %v2638_v59 = vld [vmem:[%s3883_s1 + $0xe8] sm:$0x3] }
 0x197   :  { %2563 = vrcp.f32 %v1281_v56  ;;  %v1462_v2 = vmul.f32 %v1430_v18, %v1398_v40 }
 0x198   :  { %v1459_v0 = vmul.f32 %v1427_v52, %v1395_v19  ;;  %v2646_v19 = vld [vmem:[%s3883_s1 + $0x118] sm:$0x3] }
 0x199   :  { %2436 = vmatmul.msk.f32.vlgmr.msrb.gmra.mxu2 %vm1488_vm3, %v1462_v2 }
 0x19a   :  { %2430 = vmatmul.msk.f32.vlgmr.msra.gmra.mxu3 %vm1488_vm3, %v1459_v0  ;;  %2451 = vmatpush.msk.msrb.mxu2 %vm1492_vm2, %v2638_v59  ;;  %v2647_v0 = vld [vmem:[%s3883_s1 + $0x108] sm:$0x3] }
 0x19b   :  { %2445 = vmatpush.msk.msra.mxu3 %vm1492_vm2, %v2637_v25  ;;  %v2562_v24 = vpop.eup %2561 }
 0x19c   :  { %v1293_v62 = vpop.xlane.xlu1 %1292  ;;  %v1396_v27 = vmul.f32 %v2562_v24, %v3244_v21  ;;  %v1287_v42 = vpop.xlane.xlu2 %1286  ;;  %1860 = vmatpush.msrb.mxu2 %v2640_v46 }
 0x19d   :  { %v2564_v31 = vpop.eup %2563  ;;  %2565 = vrcp.f32 %v1293_v62  ;;  %1785 = vmatpush.msra.mxu3 %v2639_v36  ;;  %v2649_v62 = vld [vmem:[%s3883_s1 + $0x110] sm:$0xff]  ;;  %v2652_v36 = vld [vmem:[%s3883_s1 + $0x138] sm:$0x3] }
 0x19e   :  { %v1397_v9 = vmul.f32 %v2564_v31, %v3241_v16  ;;  %2567 = vrcp.f32 %v1287_v42  ;;  %v1290_v21 = vpop.xlane.xlu0 %1289  ;;  %v1460_v37 = vmul.f32 %v1428_v28, %v1396_v27  ;;  %v2642_v16 = vld [vmem:[%s3883_s1 + $0xd8] sm:$0x3]  ;;  %v2648_v28 = vld [vmem:[%s3883_s1 + $0xf0] sm:$0xff]  ;;  %v2650_v27 = vld [vmem:[%s3883_s1 + $0x100] sm:$0xff] }
 0x19f   :  { %2569 = vrcp.f32 %v1290_v21  ;;  %v2651_v42 = vld [vmem:[%s3883_s1 + $0x128] sm:$0x3] }
 0x1a0   :  { %v1461_v8 = vmul.f32 %v1429_v35, %v1397_v9  ;;  %2432 = vmatmul.msk.f32.vlgmr.msrb.gmra.mxu0 %vm1488_vm3, %v1460_v37  ;;  %v2653_v9 = vld [vmem:[%s3883_s1 + $0x120] sm:$0xff]  ;;  %v1439_v37 = vld [vmem:[%s3885_s2 + $0x3c] sm:$0xf] }
 0x1a1   :  { %2447 = vmatpush.msk.msrb.mxu0 %vm1492_vm2, %v2641_v29  ;;  %v2654_v29 = vld [vmem:[%s3883_s1 + $0x130] sm:$0xff] }
 0x1a2   :  { %2434 = vmatmul.msk.f32.vlgmr.msrb.gmra.mxu1 %vm1488_vm3, %v1461_v8  ;;  %v1437_v8 = vld [vmem:[%s3885_s2 + $0x34] sm:$0xf] }
 0x1a3   :  { %v2566_v48 = vpop.eup %2565  ;;  %2449 = vmatpush.msk.msrb.mxu1 %vm1492_vm2, %v2642_v16  ;;  %1810 = vmatpush.msrb.mxu0 %v2643_v5  ;;  %v1436_v16 = vld [vmem:[%s3885_s2 + $0x30] sm:$0xf] }
 0x1a4   :  { %v2568_v61 = vpop.eup %2567  ;;  %v1401_v39 = vmul.f32 %v2566_v48, %v3256_v34  ;;  %v1296_v4 = vpop.xlane.xlu1 %1295  ;;  %v2644_v34 = vld [vmem:[%s3883_s1 + $0xd0] sm:$0xff] }
 0x1a5   :  { %v2570_v6 = vpop.eup %2569  ;;  %v1399_v17 = vmul.f32 %v2568_v61, %v3251_v32  ;;  %v1299_v51 = vpop.xlane.xlu2 %1298  ;;  %2571 = vrcp.f32 %v1296_v4  ;;  %1835 = vmatpush.msrb.mxu1 %v2644_v34 }
 0x1a6   :  { %v1400_v43 = vmul.f32 %v2570_v6, %v3254_v33  ;;  %2573 = vrcp.f32 %v1299_v51  ;;  %v1311_v18 = vpop.xlane.xlu0 %1310  ;;  %v1465_v40 = vmul.f32 %v1433_v54, %v1401_v39  ;;  %v2645_v33 = vld [vmem:[%s3883_s1 + $0xf8] sm:$0x3]  ;;  %v2657_v51 = vld [vmem:[%s3883_s1 + $0x148] sm:$0x3] }
 0x1a7   :  { %v1463_v32 = vmul.f32 %v1431_v44, %v1399_v17  ;;  %2575 = vrcp.f32 %v1311_v18  ;;  %v2658_v18 = vld [vmem:[%s3883_s1 + $0x150] sm:$0xff] }
 0x1a8   :  { %v1464_v52 = vmul.f32 %v1432_v41, %v1400_v43  ;;  %v2656_v41 = vld [vmem:[%s3883_s1 + $0x178] sm:$0x3]  ;;  %v1441_v43 = vld [vmem:[%s3885_s2 + $0x44] sm:$0xf] }
 0x1a9   :  { %2438 = vmatmul.msk.f32.vlgmr.msrb.gmra.mxu3 %vm1488_vm3, %v1463_v32 }
 0x1aa   :  { %2440 = vmatmul.msk.f32.vlgmr.msra.gmra.mxu0 %vm1488_vm3, %v1464_v52  ;;  %2442 = vmatmul.msk.f32.vlgmr.msra.gmra.mxu1 %vm1488_vm3, %v1465_v40  ;;  %v1443_v52 = vld [vmem:[%s3885_s2 + $0x4c] sm:$0xf] }
 0x1ab   :  { %v2572_v7 = vpop.eup %2571  ;;  %2453 = vmatpush.msk.msrb.mxu3 %vm1492_vm2, %v2645_v33  ;;  %2457 = vmatpush.msk.msra.mxu1 %vm1492_vm2, %v2646_v19  ;;  %v2659_v33 = vld [vmem:[%s3883_s1 + $0x170] sm:$0xff]  ;;  %v2660_v19 = vld [vmem:[%s3883_s1 + $0x140] sm:$0xff] }
 0x1ac   :  { %v2574_v56 = vpop.eup %2573  ;;  %v1402_v2 = vmul.f32 %v2572_v7, %v3271_v58  ;;  %2455 = vmatpush.msk.msra.mxu0 %vm1492_vm2, %v2647_v0  ;;  %v1302_v24 = vpop.xlane.xlu1 %1301 }
 0x1ad   :  { %v1403_v25 = vmul.f32 %v2574_v56, %v3266_v47  ;;  %v1305_v59 = vpop.xlane.xlu2 %1304  ;;  %1885 = vmatpush.msrb.mxu3 %v2648_v28  ;;  %1935 = vmatpush.msra.mxu1 %v2649_v62  ;;  %v2576_v35 = vpop.eup %2575  ;;  %v2663_v28 = vld [vmem:[%s3883_s1 + $0x198] sm:$0x3] }
 0x1ae   :  { %v1466_v58 = vmul.f32 %v1434_v13, %v1402_v2  ;;  %2577 = vrcp.f32 %v1305_v59  ;;  %v1317_v31 = vpop.xlane.xlu0 %1316  ;;  %1910 = vmatpush.msra.mxu0 %v2650_v27  ;;  %v1407_v46 = vmul.f32 %v2576_v35, %v3269_v57  ;;  %v2661_v59 = vld [vmem:[%s3883_s1 + $0x168] sm:$0x3]  ;;  %v1445_v35 = vld [vmem:[%s3885_s2 + $0x54] sm:$0xf] }
 0x1af   :  { %v1467_v47 = vmul.f32 %v1435_v20, %v1403_v25  ;;  %2579 = vrcp.f32 %v1302_v24  ;;  %v2662_v24 = vld [vmem:[%s3883_s1 + $0x1b8] sm:$0x3] }
 0x1b0   :  { %2444 = vmatmul.msk.f32.vlgmr.msra.gmra.mxu2 %vm1488_vm3, %v1466_v58  ;;  %2581 = vrcp.f32 %v1317_v31  ;;  %v1471_v5 = vmul.f32 %v1439_v37, %v1407_v46  ;;  %v1442_v58 = vld [vmem:[%s3885_s2 + $0x48] sm:$0xf]  ;;  %v2664_v31 = vld [vmem:[%s3883_s1 + $0x160] sm:$0xff]  ;;  %v2665_v46 = vld [vmem:[%s3883_s1 + $0x1b0] sm:$0xff] }
 0x1b1   :  { %2446 = vmatmul.msk.f32.vlgmr.msra.gmra.mxu3 %vm1488_vm3, %v1467_v47  ;;  %2459 = vmatpush.msk.msra.mxu2 %vm1492_vm2, %v2651_v42 }
 0x1b2   :  { %2461 = vmatpush.msk.msra.mxu3 %vm1492_vm2, %v2652_v36 }
 0x1b3   :  { %1960 = vmatpush.msra.mxu2 %v2653_v9  ;;  %v2666_v9 = vld [vmem:[%s3883_s1 + $0x190] sm:$0xff] }
 0x1b4   :  { %v2578_v21 = vpop.eup %2577  ;;  %1985 = vmatpush.msra.mxu3 %v2654_v29  ;;  %v1323_v44 = vpop.xlane.xlu1 %1322 }
 0x1b5   :  { %v2580_v57 = vpop.eup %2579  ;;  %v1405_v48 = vmul.f32 %v2578_v21, %v3282_v14  ;;  %v1308_v61 = vpop.xlane.xlu2 %1307  ;;  %v2655_v14 = vld [vmem:[%s3883_s1 + $0x158] sm:$0x3] }
 0x1b6   :  { %v1404_v39 = vmul.f32 %v2580_v57, %v3287_v22  ;;  %2583 = vrcp.f32 %v1308_v61  ;;  %v1320_v4 = vpop.xlane.xlu0 %1319  ;;  %v2582_v17 = vpop.eup %2581  ;;  %v2669_v61 = vld [vmem:[%s3883_s1 + $0x1d8] sm:$0x3] }
 0x1b7   :  { %v1469_v6 = vmul.f32 %v1437_v8, %v1405_v48  ;;  %2585 = vrcp.f32 %v1323_v44  ;;  %v1409_v22 = vmul.f32 %v2582_v17, %v3284_v15  ;;  %v1438_v15 = vld [vmem:[%s3885_s2 + $0x38] sm:$0xf]  ;;  %v2667_v48 = vld [vmem:[%s3883_s1 + $0x1a8] sm:$0x3] }
 0x1b8   :  { %v1468_v54 = vmul.f32 %v1436_v16, %v1404_v39  ;;  %2587 = vrcp.f32 %v1320_v4  ;;  %v2668_v16 = vld [vmem:[%s3883_s1 + $0x188] sm:$0x3]  ;;  %v1444_v39 = vld [vmem:[%s3885_s2 + $0x50] sm:$0xf]  ;;  %v2670_v4 = vld [vmem:[%s3883_s1 + $0x1a0] sm:$0xff] }
 0x1b9   :  { %2450 = vmatmul.msk.f32.vlgmr.msrb.gmra.mxu1 %vm1488_vm3, %v1469_v6  ;;  %2454 = vmatmul.msk.f32.vlgmr.msrb.gmra.mxu3 %vm1488_vm3, %v1471_v5  ;;  %v1473_v20 = vmul.f32 %v1441_v43, %v1409_v22  ;;  %v1446_v17 = vld [vmem:[%s3885_s2 + $0x58] sm:$0xf]  ;;  %v2671_v22 = vld [vmem:[%s3883_s1 + $0x180] sm:$0xff] }
 0x1ba   :  { %2448 = vmatmul.msk.f32.vlgmr.msrb.gmra.mxu0 %vm1488_vm3, %v1468_v54  ;;  %2465 = vmatpush.msk.msrb.mxu1 %vm1492_vm2, %v2655_v14 }
 0x1bb   :  { %2469 = vmatpush.msk.msrb.mxu3 %vm1492_vm2, %v2656_v41  ;;  %2463 = vmatpush.msk.msrb.mxu0 %vm1492_vm2, %v2657_v51  ;;  %v2672_v41 = vld [vmem:[%s3883_s1 + $0x1d0] sm:$0xff] }
 0x1bc   :  { %v2584_v34 = vpop.eup %2583  ;;  %2035 = vmatpush.msrb.mxu1 %v2658_v18  ;;  %v1329_v13 = vpop.xlane.xlu1 %1328  ;;  %v2673_v18 = vld [vmem:[%s3883_s1 + $0x1f8] sm:$0x3] }
 0x1bd   :  { %v2586_v32 = vpop.eup %2585  ;;  %v1406_v40 = vmul.f32 %v2584_v34, %v3296_v1  ;;  %v1314_v7 = vpop.xlane.xlu2 %1313  ;;  %2085 = vmatpush.msrb.mxu3 %v2659_v33  ;;  %2010 = vmatpush.msrb.mxu0 %v2660_v19  ;;  %v2676_v33 = vld [vmem:[%s3883_s1 + $0x1f0] sm:$0xff] }
 0x1be   :  { %v1411_v56 = vmul.f32 %v2586_v32, %v3301_v38  ;;  %2589 = vrcp.f32 %v1314_v7  ;;  %v1326_v1 = vpop.xlane.xlu0 %1325  ;;  %v2588_v0 = vpop.eup %2587  ;;  %v2674_v32 = vld [vmem:[%s3883_s1 + $0x1e8] sm:$0x3]  ;;  %v1451_v7 = vld [vmem:[%s3885_s2 + $0x6c] sm:$0xf] }
 0x1bf   :  { %v1470_v2 = vmul.f32 %v1438_v15, %v1406_v40  ;;  %2591 = vrcp.f32 %v1329_v13  ;;  %v1410_v38 = vmul.f32 %v2588_v0, %v3299_v3  ;;  %v1440_v3 = vld [vmem:[%s3885_s2 + $0x40] sm:$0xf]  ;;  %v2675_v40 = vld [vmem:[%s3883_s1 + $0x1c8] sm:$0x3] }
 0x1c0   :  { %v1475_v25 = vmul.f32 %v1443_v52, %v1411_v56  ;;  %2593 = vrcp.f32 %v1326_v1  ;;  %v1448_v1 = vld [vmem:[%s3885_s2 + $0x60] sm:$0xf] }
 0x1c1   :  { %2452 = vmatmul.msk.f32.vlgmr.msrb.gmra.mxu2 %vm1488_vm3, %v1470_v2  ;;  %2458 = vmatmul.msk.f32.vlgmr.msra.gmra.mxu1 %vm1488_vm3, %v1473_v20  ;;  %v2677_v2 = vld [vmem:[%s3883_s1 + $0x1e0] sm:$0xff] }
 0x1c2   :  { %2462 = vmatmul.msk.f32.vlgmr.msra.gmra.mxu3 %vm1488_vm3, %v1475_v25  ;;  %2467 = vmatpush.msk.msrb.mxu2 %vm1492_vm2, %v2661_v59  ;;  %v2678_v0 = vld [vmem:[%s3883_s1 + $0x1c0] sm:$0xff] }
 0x1c3   :  { %2477 = vmatpush.msk.msra.mxu3 %vm1492_vm2, %v2662_v24  ;;  %2473 = vmatpush.msk.msra.mxu1 %vm1492_vm2, %v2663_v28 }
 0x1c4   :  { %v2590_v62 = vpop.eup %2589  ;;  %2060 = vmatpush.msrb.mxu2 %v2664_v31  ;;  %v1332_v36 = vpop.xlane.xlu1 %1331 }
 0x1c5   :  { %v2592_v27 = vpop.eup %2591  ;;  %v1408_v47 = vmul.f32 %v2590_v62, %v3310_v10  ;;  %v1335_v42 = vpop.xlane.xlu2 %1334  ;;  %2185 = vmatpush.msra.mxu3 %v2665_v46  ;;  %2135 = vmatpush.msra.mxu1 %v2666_v9  ;;  %v1474_v10 = vmul.f32 %v1442_v58, %v1410_v38  ;;  %v1454_v62 = vld [vmem:[%s3885_s2 + $0x78] sm:$0xf] }
 0x1c6   :  { %v1413_v21 = vmul.f32 %v2592_v27, %v3315_v60  ;;  %2595 = vrcp.f32 %v1335_v42  ;;  %v1347_v8 = vpop.xlane.xlu0 %1346  ;;  %v2594_v29 = vpop.eup %2593 }
 0x1c7   :  { %v1472_v37 = vmul.f32 %v1440_v3, %v1408_v47  ;;  %2597 = vrcp.f32 %v1332_v36  ;;  %v1412_v60 = vmul.f32 %v2594_v29, %v3313_v53  ;;  %v1447_v53 = vld [vmem:[%s3885_s2 + $0x5c] sm:$0xf] }
 0x1c8   :  { %v1477_v57 = vmul.f32 %v1445_v35, %v1413_v21  ;;  %2599 = vrcp.f32 %v1347_v8  ;;  %v1455_v35 = vld [vmem:[%s3885_s2 + $0x7c] sm:$0xf] }
 0x1c9   :  { %2456 = vmatmul.msk.f32.vlgmr.msra.gmra.mxu0 %vm1488_vm3, %v1472_v37  ;;  %2460 = vmatmul.msk.f32.vlgmr.msra.gmra.mxu2 %vm1488_vm3, %v1474_v10  ;;  %v1452_v37 = vld [vmem:[%s3885_s2 + $0x70] sm:$0xf] }
 0x1ca   :  { %2466 = vmatmul.msk.f32.vlgmr.msrb.gmra.mxu1 %vm1488_vm3, %v1477_v57  ;;  %2475 = vmatpush.msk.msra.mxu2 %vm1492_vm2, %v2667_v48 }
 0x1cb   :  { %2471 = vmatpush.msk.msra.mxu0 %vm1492_vm2, %v2668_v16  ;;  %2481 = vmatpush.msk.msrb.mxu1 %vm1492_vm2, %v2669_v61 }
 0x1cc   :  { %v2596_v44 = vpop.eup %2595  ;;  %2160 = vmatpush.msra.mxu2 %v2670_v4  ;;  %v1338_v14 = vpop.xlane.xlu1 %1337 }
 0x1cd   :  { %v2598_v5 = vpop.eup %2597  ;;  %v1415_v6 = vmul.f32 %v2596_v44, %v3326_v50  ;;  %v1344_v54 = vpop.xlane.xlu2 %1343  ;;  %2110 = vmatpush.msra.mxu0 %v2671_v22  ;;  %2235 = vmatpush.msrb.mxu1 %v2672_v41  ;;  %v1476_v50 = vmul.f32 %v1444_v39, %v1412_v60 }
 0x1ce   :  { %v1414_v51 = vmul.f32 %v2598_v5, %v3328_v55  ;;  %2601 = vrcp.f32 %v1344_v54  ;;  %v2600_v43 = vpop.eup %2599 }
 0x1cf   :  { %v1479_v34 = vmul.f32 %v1447_v53, %v1415_v6  ;;  %2603 = vrcp.f32 %v1338_v14  ;;  %v1419_v55 = vmul.f32 %v2600_v43, %v3333_v23  ;;  %v1450_v23 = vld [vmem:[%s3885_s2 + $0x68] sm:$0xf] }
 0x1d0   :  { %v1478_v15 = vmul.f32 %v1446_v17, %v1414_v51 }
 0x1d1   :  { %2464 = vmatmul.msk.f32.vlgmr.msrb.gmra.mxu0 %vm1488_vm3, %v1476_v50  ;;  %2470 = vmatmul.msk.f32.vlgmr.msrb.gmra.mxu3 %vm1488_vm3, %v1479_v34  ;;  %v1483_v59 = vmul.f32 %v1451_v7, %v1419_v55 }
 0x1d2   :  { %2468 = vmatmul.msk.f32.vlgmr.msrb.gmra.mxu2 %vm1488_vm3, %v1478_v15  ;;  %2485 = vmatpush.msk.msrb.mxu3 %vm1492_vm2, %v2673_v18 }
 0x1d3   :  { %2483 = vmatpush.msk.msrb.mxu2 %vm1492_vm2, %v2674_v32  ;;  %2479 = vmatpush.msk.msrb.mxu0 %vm1492_vm2, %v2675_v40 }
 0x1d4   :  { %v2602_v52 = vpop.eup %2601  ;;  %v1356_v13 = vpop.xlane.xlu0 %1355  ;;  %2285 = vmatpush.msrb.mxu3 %v2676_v33 }
 0x1d5   :  { %v2604_v19 = vpop.eup %2603  ;;  %v1418_v56 = vmul.f32 %v2602_v52, %v3342_v30  ;;  %v1341_v20 = vpop.xlane.xlu2 %1340  ;;  %2605 = vrcp.f32 %v1356_v13  ;;  %2260 = vmatpush.msrb.mxu2 %v2677_v2  ;;  %2210 = vmatpush.msrb.mxu0 %v2678_v0 }
 0x1d6   :  { %v1416_v25 = vmul.f32 %v2604_v19, %v3339_v26  ;;  %2607 = vrcp.f32 %v1341_v20  ;;  %v1359_v30 = vpop.xlane.xlu1 %1358  ;;  %v1449_v26 = vld [vmem:[%s3885_s2 + $0x64] sm:$0xf] }
 0x1d7   :  { %v1482_v38 = vmul.f32 %v1450_v23, %v1418_v56  ;;  %2609 = vrcp.f32 %v1359_v30 }
 0x1d8   :  { %v1480_v24 = vmul.f32 %v1448_v1, %v1416_v25 }
 0x1d9   :  { %2478 = vmatmul.msk.f32.vlgmr.msra.gmra.mxu3 %vm1488_vm3, %v1483_v59 }
 0x1da   :  { %2472 = vmatmul.msk.f32.vlgmr.msra.gmra.mxu0 %vm1488_vm3, %v1480_v24  ;;  %2476 = vmatmul.msk.f32.vlgmr.msra.gmra.mxu2 %vm1488_vm3, %v1482_v38 }
 0x1db   :  { %v2606_v28 = vpop.eup %2605 }
 0x1dc   :  { %v2608_v58 = vpop.eup %2607  ;;  %v1422_v3 = vmul.f32 %v2606_v28, %v3353_v49  ;;  %v1353_v31 = vpop.xlane.xlu0 %1352 }
 0x1dd   :  { %v2610_v27 = vpop.eup %2609  ;;  %v1417_v47 = vmul.f32 %v2608_v58, %v3351_v63  ;;  %v1350_v42 = vpop.xlane.xlu2 %1349  ;;  %2611 = vrcp.f32 %v1353_v31  ;;  %v1453_v63 = vld [vmem:[%s3885_s2 + $0x74] sm:$0xf] }
 0x1de   :  { %v1486_v36 = vmul.f32 %v1454_v62, %v1422_v3  ;;  %v1423_v46 = vmul.f32 %v2610_v27, %v3357_v12  ;;  %2613 = vrcp.f32 %v1350_v42 }
 0x1df   :  { %v1481_v9 = vmul.f32 %v1449_v26, %v1417_v47 }
 0x1e0   :  { %v1487_v21 = vmul.f32 %v1455_v35, %v1423_v46 }
 0x1e1   :  { %2474 = vmatmul.msk.f32.vlgmr.msra.gmra.mxu1 %vm1488_vm3, %v1481_v9 }
 0x1e2   :  { %2484 = vmatmul.msk.f32.vlgmr.msrb.gmra.mxu2 %vm1488_vm3, %v1486_v36  ;;  %2486 = vmatmul.msk.f32.vlgmr.msrb.gmra.mxu3 %vm1488_vm3, %v1487_v21 }
 0x1e3   :  { %v2612_v49 = vpop.eup %2611 }
 0x1e4   :  { %v2614_v10 = vpop.eup %2613  ;;  %v1421_v12 = vmul.f32 %v2612_v49, %v3363_v11 }
 0x1e5   :  { %v1420_v8 = vmul.f32 %v2614_v10, %v3365_v45 }
 0x1e6   :  { %v1485_v29 = vmul.f32 %v1453_v63, %v1421_v12 }
 0x1e7   :  { %v1484_v57 = vmul.f32 %v1452_v37, %v1420_v8 }
 0x1e9   :  { %2480 = vmatmul.msk.f32.vlgmr.msrb.gmra.mxu0 %vm1488_vm3, %v1484_v57  ;;  %2482 = vmatmul.msk.f32.vlgmr.msrb.gmra.mxu1 %vm1488_vm3, %v1485_v29 }
 0x206   :  { %v1512_v48 = vpop.f32.mrf.mxu0 }
 0x207   :  { %2291 = vst.msk [vmem:[%s3886_s3] sm:$0xf] %vm2290_vm4, %v1512_v48 }
 0x20f   :  { %v1537_v60 = vpop.f32.mrf.mxu1 }
 0x210   :  { %2292 = vst.msk [vmem:[%s3886_s3 + $0x4] sm:$0xf] %vm2290_vm4, %v1537_v60 }
 0x214   :  { %v1562_v11 = vpop.f32.mrf.mxu2 }
 0x215   :  { %2293 = vst.msk [vmem:[%s3886_s3 + $0x8] sm:$0xf] %vm2290_vm4, %v1562_v11 }
 0x21c   :  { %v1662_v16 = vpop.f32.mrf.mxu2 }
 0x21d   :  { %v1587_v45 = vpop.f32.mrf.mxu3  ;;  %v1612_v61 = vpop.f32.mrf.mxu0  ;;  %2297 = vst.msk [vmem:[%s3886_s3 + $0x18] sm:$0xf] %vm2290_vm4, %v1662_v16 }
 0x21e   :  { %2294 = vst.msk [vmem:[%s3886_s3 + $0xc] sm:$0xf] %vm2290_vm4, %v1587_v45 }
 0x21f   :  { %2295 = vst.msk [vmem:[%s3886_s3 + $0x10] sm:$0xf] %vm2290_vm4, %v1612_v61  ;;  %v1637_v44 = vpop.f32.mrf.mxu1 }
 0x220   :  { %2296 = vst.msk [vmem:[%s3886_s3 + $0x14] sm:$0xf] %vm2290_vm4, %v1637_v44 }
 0x227   :  { %v1712_v39 = vpop.f32.mrf.mxu0  ;;  %v1737_v53 = vpop.f32.mrf.mxu1 }
 0x228   :  { %2299 = vst.msk [vmem:[%s3886_s3 + $0x20] sm:$0xf] %vm2290_vm4, %v1712_v39 }
 0x229   :  { %2300 = vst.msk [vmem:[%s3886_s3 + $0x24] sm:$0xf] %vm2290_vm4, %v1737_v53 }
 0x22c   :  { %v1687_v4 = vpop.f32.mrf.mxu3 }
 0x22d   :  { %2298 = vst.msk [vmem:[%s3886_s3 + $0x1c] sm:$0xf] %vm2290_vm4, %v1687_v4 }
 0x233   :  { %v1762_v5 = vpop.f32.mrf.mxu2 }
 0x234   :  { %2301 = vst.msk [vmem:[%s3886_s3 + $0x28] sm:$0xf] %vm2290_vm4, %v1762_v5  ;;  %v1787_v6 = vpop.f32.mrf.mxu3 }
 0x235   :  { %2302 = vst.msk [vmem:[%s3886_s3 + $0x2c] sm:$0xf] %vm2290_vm4, %v1787_v6 }
 0x236   :  { %v1837_v17 = vpop.f32.mrf.mxu1 }
 0x237   :  { %v1812_v54 = vpop.f32.mrf.mxu0  ;;  %2304 = vst.msk [vmem:[%s3886_s3 + $0x34] sm:$0xf] %vm2290_vm4, %v1837_v17 }
 0x238   :  { %2303 = vst.msk [vmem:[%s3886_s3 + $0x30] sm:$0xf] %vm2290_vm4, %v1812_v54 }
 0x23c   :  { %v1887_v14 = vpop.f32.mrf.mxu3 }
 0x23d   :  { %2306 = vst.msk [vmem:[%s3886_s3 + $0x3c] sm:$0xf] %vm2290_vm4, %v1887_v14 }
 0x23e   :  { %v1937_v22 = vpop.f32.mrf.mxu1 }
 0x23f   :  { %2308 = vst.msk [vmem:[%s3886_s3 + $0x44] sm:$0xf] %vm2290_vm4, %v1937_v22 }
 0x244   :  { %v1862_v41 = vpop.f32.mrf.mxu2 }
 0x245   :  { %2305 = vst.msk [vmem:[%s3886_s3 + $0x38] sm:$0xf] %vm2290_vm4, %v1862_v41  ;;  %v1987_v51 = vpop.f32.mrf.mxu3 }
 0x246   :  { %2310 = vst.msk [vmem:[%s3886_s3 + $0x4c] sm:$0xf] %vm2290_vm4, %v1987_v51  ;;  %v1912_v50 = vpop.f32.mrf.mxu0 }
 0x247   :  { %2307 = vst.msk [vmem:[%s3886_s3 + $0x40] sm:$0xf] %vm2290_vm4, %v1912_v50  ;;  %v2037_v34 = vpop.f32.mrf.mxu1 }
 0x248   :  { %2312 = vst.msk [vmem:[%s3886_s3 + $0x54] sm:$0xf] %vm2290_vm4, %v2037_v34 }
 0x24c   :  { %v1962_v43 = vpop.f32.mrf.mxu2 }
 0x24d   :  { %2309 = vst.msk [vmem:[%s3886_s3 + $0x48] sm:$0xf] %vm2290_vm4, %v1962_v43 }
 0x24e   :  { %v2012_v15 = vpop.f32.mrf.mxu0 }
 0x24f   :  { %2311 = vst.msk [vmem:[%s3886_s3 + $0x50] sm:$0xf] %vm2290_vm4, %v2012_v15 }
 0x254   :  { %v2087_v18 = vpop.f32.mrf.mxu3 }
 0x255   :  { %v2062_v55 = vpop.f32.mrf.mxu2  ;;  %2314 = vst.msk [vmem:[%s3886_s3 + $0x5c] sm:$0xf] %vm2290_vm4, %v2087_v18 }
 0x256   :  { %2313 = vst.msk [vmem:[%s3886_s3 + $0x58] sm:$0xf] %vm2290_vm4, %v2062_v55 }
 0x257   :  { %v2112_v32 = vpop.f32.mrf.mxu0 }
 0x258   :  { %2315 = vst.msk [vmem:[%s3886_s3 + $0x60] sm:$0xf] %vm2290_vm4, %v2112_v32 }
 0x25c   :  { %v2187_v40 = vpop.f32.mrf.mxu3 }
 0x25d   :  { %v2162_v52 = vpop.f32.mrf.mxu2  ;;  %2318 = vst.msk [vmem:[%s3886_s3 + $0x6c] sm:$0xf] %vm2290_vm4, %v2187_v40 }
 0x25e   :  { %2317 = vst.msk [vmem:[%s3886_s3 + $0x68] sm:$0xf] %vm2290_vm4, %v2162_v52  ;;  %v2137_v7 = vpop.f32.mrf.mxu1 }
 0x25f   :  { %2316 = vst.msk [vmem:[%s3886_s3 + $0x64] sm:$0xf] %vm2290_vm4, %v2137_v7 }
 0x265   :  { %v2262_v23 = vpop.f32.mrf.mxu2  ;;  %v2287_v13 = vpop.f32.mrf.mxu3 }
 0x266   :  { %2321 = vst.msk [vmem:[%s3886_s3 + $0x78] sm:$0xf] %vm2290_vm4, %v2262_v23  ;;  %v2212_v33 = vpop.f32.mrf.mxu0  ;;  %v2237_v19 = vpop.f32.mrf.mxu1 }
 0x267   :  { %2319 = vst.msk [vmem:[%s3886_s3 + $0x70] sm:$0xf] %vm2290_vm4, %v2212_v33 }
 0x268   :  { %2320 = vst.msk [vmem:[%s3886_s3 + $0x74] sm:$0xf] %vm2290_vm4, %v2237_v19 }
 0x269   :  { %2322 = vst.msk [vmem:[%s3886_s3 + $0x7c] sm:$0xf] %vm2290_vm4, %v2287_v13 }

</bundles_post_ra>
